<compile_context>
chip_gen: v6e
topology: v6e:2x2x1
jax: 0.10.0
libtpu: 0.0.40
codegen_flags: <defaults>
</compile_context>

<pallas_src>
import functools
import math

import jax
import jax.numpy as jnp
from jax.experimental import pallas as pl
from jax.experimental.pallas import tpu as pltpu


def _layer_norm(x, w, b, eps=1e-5):
    # fp16-safe LayerNorm: statistics + affine in float32, cast back.
    xf = x.astype(jnp.float32)
    mean = jnp.mean(xf, axis=-1, keepdims=True)
    var = jnp.mean(jnp.square(xf - mean), axis=-1, keepdims=True)
    y = (xf - mean) * jax.lax.rsqrt(var + eps)
    y = y * w.astype(jnp.float32) + b.astype(jnp.float32)
    return y.astype(x.dtype)


def transformer_stack_kernel(*refs, n_head, use_mask):
    """One grid step == one ResidualAttentionBlock applied to the resident x."""
    if use_mask:
        (x_ref, mask_ref,
         ln1_w_ref, ln1_b_ref, w_in_ref, b_in_ref, w_out_ref, b_out_ref,
         ln2_w_ref, ln2_b_ref, w_fc_ref, b_fc_ref, w_proj_ref, b_proj_ref,
         o_ref) = refs
    else:
        (x_ref,
         ln1_w_ref, ln1_b_ref, w_in_ref, b_in_ref, w_out_ref, b_out_ref,
         ln2_w_ref, ln2_b_ref, w_fc_ref, b_fc_ref, w_proj_ref, b_proj_ref,
         o_ref) = refs
        mask_ref = None

    layer = pl.program_id(0)

    # Layer 0: seed the resident VMEM residual stream from the input.
    @pl.when(layer == 0)
    def _():
        o_ref[...] = x_ref[...]

    x = o_ref[...]                                   # (N, L, D) residual stream
    N, L, D = x.shape
    H = n_head
    Dh = D // H
    scale = 1.0 / math.sqrt(Dh)
    mxu_dtype = jnp.bfloat16

    # ---------------- attention branch ----------------
    xn = _layer_norm(x, ln1_w_ref[0], ln1_b_ref[0])                  # (N, L, D)
    xn2d = xn.reshape(N * L, D).astype(mxu_dtype)

    # Fused QKV projection: (N*L, D) @ (D, 3D) -> (N*L, 3D), f32 accumulation.
    qkv = jnp.dot(xn2d, w_in_ref[0], preferred_element_type=jnp.float32)
    qkv = qkv + b_in_ref[0].astype(jnp.float32)

    q = (qkv[:, 0 * D:1 * D] * scale).reshape(N, L, D)
    k = qkv[:, 1 * D:2 * D].reshape(N, L, D)
    v = qkv[:, 2 * D:3 * D].reshape(N, L, D)

    # (N, L, D) -> (H*N, L, Dh): batch all heads & batches into ONE contraction.
    def split_heads(t):
        return jnp.concatenate(
            [t[:, :, h * Dh:(h + 1) * Dh] for h in range(H)], axis=0
        ).astype(mxu_dtype)

    qb, kb, vb = split_heads(q), split_heads(k), split_heads(v)

    s = jnp.einsum('bqd,bkd->bqk', qb, kb,
                   preferred_element_type=jnp.float32)               # (H*N, L, L)
    if use_mask:
        s = s + mask_ref[...].astype(jnp.float32)                    # (L, L) bcast

    s = s - jnp.max(s, axis=-1, keepdims=True)
    p = jnp.exp(s)
    p = p * pl.reciprocal(jnp.sum(p, axis=-1, keepdims=True), approx=True)

    ctx = jnp.einsum('bqk,bkd->bqd', p.astype(mxu_dtype), vb,
                     preferred_element_type=jnp.float32)             # (H*N, L, Dh)
    # Merge heads back to (N, L, D), head-major feature layout (matches PyTorch).
    ctx = jnp.concatenate([ctx[h * N:(h + 1) * N] for h in range(H)], axis=-1)

    attn_out = jnp.dot(ctx.reshape(N * L, D).astype(mxu_dtype), w_out_ref[0],
                       preferred_element_type=jnp.float32)
    attn_out = attn_out + b_out_ref[0].astype(jnp.float32)
    x = x + attn_out.reshape(N, L, D).astype(x.dtype)

    # ---------------- MLP branch ----------------
    xn2 = _layer_norm(x, ln2_w_ref[0], ln2_b_ref[0]).reshape(N * L, D)
    h1 = jnp.dot(xn2.astype(mxu_dtype), w_fc_ref[0],
                 preferred_element_type=jnp.float32)
    h1 = h1 + b_fc_ref[0].astype(jnp.float32)
    h1 = h1 * jax.nn.sigmoid(1.702 * h1)                             # QuickGELU (f32)
    mlp_out = jnp.dot(h1.astype(mxu_dtype), w_proj_ref[0],
                      preferred_element_type=jnp.float32)
    mlp_out = mlp_out + b_proj_ref[0].astype(jnp.float32)

    o_ref[...] = x + mlp_out.reshape(N, L, D).astype(x.dtype)


def transformer_forward(x, params, *, n_head, attn_mask=None,
                        weight_dtype=jnp.bfloat16):
    """x: (L, N, D). params: list (per layer) of 12-tuples (see init_params)."""
    L, N, D = x.shape
    assert D % n_head == 0
    layers = len(params)

    stack = lambda i: jnp.stack([p[i] for p in params], axis=0)

    # Stack per-layer params; pre-transpose weight matrices to (K, N) layout and
    # store matmul weights in bf16 (halves weight DMA, native MXU dtype).
    ln1_w, ln1_b = stack(0), stack(1)                                  # (layers,1,D)
    w_in = jnp.transpose(stack(2), (0, 2, 1)).astype(weight_dtype)     # (layers,D,3D)
    b_in = stack(3)                                                    # (layers,1,3D)
    w_out = jnp.transpose(stack(4), (0, 2, 1)).astype(weight_dtype)    # (layers,D,D)
    b_out = stack(5)
    ln2_w, ln2_b = stack(6), stack(7)
    w_fc = jnp.transpose(stack(8), (0, 2, 1)).astype(weight_dtype)     # (layers,D,4D)
    b_fc = stack(9)
    w_proj = jnp.transpose(stack(10), (0, 2, 1)).astype(weight_dtype)  # (layers,4D,D)
    b_proj = stack(11)

    x_nld = jnp.transpose(x, (1, 0, 2))                                # (N, L, D)
    use_mask = attn_mask is not None

    def resident(shape):
        nd = len(shape)
        return pl.BlockSpec(shape, lambda l, _n=nd: (0,) * _n)

    def per_layer(arr):
        nd = arr.ndim
        return pl.BlockSpec((1,) + arr.shape[1:],
                            lambda l, _n=nd: (l,) + (0,) * (_n - 1))

    inputs = [x_nld]
    in_specs = [resident((N, L, D))]
    if use_mask:
        inputs.append(attn_mask.astype(jnp.float32))
        in_specs.append(resident((L, L)))
    weights = [ln1_w, ln1_b, w_in, b_in, w_out, b_out,
               ln2_w, ln2_b, w_fc, b_fc, w_proj, b_proj]
    inputs += weights
    in_specs += [per_layer(w) for w in weights]

    kernel = functools.partial(transformer_stack_kernel,
                               n_head=n_head, use_mask=use_mask)

    # TODO(synk): for very long sequences / large batch, tile the token dim
    # with a flash-style streaming attention and mark that axis "parallel"
    # (v7x dual-TensorCore); at CLIP-scale L*N the (N,L,D) block fits VMEM.
    out = pl.pallas_call(
        kernel,
        out_shape=jax.ShapeDtypeStruct((N, L, D), x.dtype),
        grid=(layers,),
        in_specs=in_specs,
        out_specs=resident((N, L, D)),
        input_output_aliases={0: 0},
        compiler_params=pltpu.CompilerParams(
            dimension_semantics=("arbitrary",),
            vmem_limit_bytes=64 * 1024 * 1024,
        ),
    )(*inputs)
    return jnp.transpose(out, (1, 0, 2))


def init_params(key, width, layers, dtype=jnp.float32):
    """Deterministic synthetic parameters with the shapes nn.* would create."""
    D = width
    params = []
    for _ in range(layers):
        key, *ks = jax.random.split(key, 9)
        ln1_w = jnp.ones((1, D), dtype)
        ln1_b = jnp.zeros((1, D), dtype)
        w_in = (0.02 * jax.random.normal(ks[0], (3 * D, D))).astype(dtype)   # in_proj_weight
        b_in = (0.02 * jax.random.normal(ks[1], (1, 3 * D))).astype(dtype)   # in_proj_bias
        w_out = (0.02 * jax.random.normal(ks[2], (D, D))).astype(dtype)      # out_proj.weight
        b_out = (0.02 * jax.random.normal(ks[3], (1, D))).astype(dtype)      # out_proj.bias
        ln2_w = jnp.ones((1, D), dtype)
        ln2_b = jnp.zeros((1, D), dtype)
        w_fc = (0.02 * jax.random.normal(ks[4], (4 * D, D))).astype(dtype)   # mlp.c_fc.weight
        b_fc = (0.02 * jax.random.normal(ks[5], (1, 4 * D))).astype(dtype)   # mlp.c_fc.bias
        w_proj = (0.02 * jax.random.normal(ks[6], (D, 4 * D))).astype(dtype) # mlp.c_proj.weight
        b_proj = (0.02 * jax.random.normal(ks[7], (1, D))).astype(dtype)     # mlp.c_proj.bias
        params.append((ln1_w, ln1_b, w_in, b_in, w_out, b_out,
                       ln2_w, ln2_b, w_fc, b_fc, w_proj, b_proj))
    return params


def _reference_forward(x, params, n_head, mask):
    # Pure-JAX (f32) mirror of the PyTorch semantics, for verification.
    def ln(t, w, b):
        m = t.mean(-1, keepdims=True)
        v = ((t - m) ** 2).mean(-1, keepdims=True)
        return (t - m) / jnp.sqrt(v + 1e-5) * w + b

    L, N, D = x.shape
    Dh = D // n_head
    for (ln1_w, ln1_b, w_in, b_in, w_out, b_out,
         ln2_w, ln2_b, w_fc, b_fc, w_proj, b_proj) in params:
        xn = ln(x, ln1_w[0], ln1_b[0])
        qkv = xn @ w_in.T + b_in[0]
        q, k, v = jnp.split(qkv, 3, axis=-1)
        q = q.reshape(L, N, n_head, Dh).transpose(1, 2, 0, 3) / math.sqrt(Dh)
        k = k.reshape(L, N, n_head, Dh).transpose(1, 2, 0, 3)
        v = v.reshape(L, N, n_head, Dh).transpose(1, 2, 0, 3)
        s = q @ k.transpose(0, 1, 3, 2) + mask
        p = jax.nn.softmax(s, axis=-1)
        ctx = (p @ v).transpose(2, 0, 1, 3).reshape(L, N, D)
        x = x + ctx @ w_out.T + b_out[0]
        xn2 = ln(x, ln2_w[0], ln2_b[0])
        h = xn2 @ w_fc.T + b_fc[0]
        h = h * jax.nn.sigmoid(1.702 * h)
        x = x + h @ w_proj.T + b_proj[0]
    return x


if __name__ == "__main__":
    # Small, module-consistent shapes: Transformer(width=32, layers=2, heads=4)
    # applied to x of shape (seq=8, batch=2, width=32).
    width, layers, heads = 32, 2, 4
    L, N = 8, 2

    key = jax.random.PRNGKey(0)
    kx, kp = jax.random.split(key)
    x = jax.random.normal(kx, (L, N, width), dtype=jnp.float32)
    params = init_params(kp, width, layers)

    # 1) no attention mask (vision-tower configuration)
    out = transformer_forward(x, params, n_head=heads, attn_mask=None)
    out = jax.block_until_ready(out)
    ref = _reference_forward(x, params, heads, jnp.zeros((L, L), jnp.float32))
    assert out.shape == (L, N, width)
    err = float(jnp.max(jnp.abs(out - ref)))
    assert jnp.allclose(out, ref, rtol=2e-2, atol=2e-2), f"no-mask mismatch {err}"

    # 2) causal additive mask (text-tower configuration)
    causal = jnp.where(jnp.tril(jnp.ones((L, L), bool)), 0.0, -1e9).astype(jnp.float32)
    out_m = transformer_forward(x, params, n_head=heads, attn_mask=causal)
    out_m = jax.block_until_ready(out_m)
    ref_m = _reference_forward(x, params, heads, causal)
    err_m = float(jnp.max(jnp.abs(out_m - ref_m)))
    assert jnp.allclose(out_m, ref_m, rtol=2e-2, atol=2e-2), f"mask mismatch {err_m}"

    # TODO(synk): checkpoint_sequential (activation checkpointing) is a
    # training-memory optimization; forward semantics are identical, so it is
    # intentionally not reproduced.
    print("KERNEL_OK")
</pallas_src>

<mosaic_0001>
module attributes {stable_mosaic.version = 11 : i64} {
  func.func @transformer_stack_kernel(%arg0: i32, %arg1: memref<2x8x32xf32, #tpu.memory_space<vmem>>, %arg2: memref<1x1x32xf32, #tpu.memory_space<vmem>>, %arg3: memref<1x1x32xf32, #tpu.memory_space<vmem>>, %arg4: memref<1x32x96xbf16, #tpu.memory_space<vmem>>, %arg5: memref<1x1x96xf32, #tpu.memory_space<vmem>>, %arg6: memref<1x32x32xbf16, #tpu.memory_space<vmem>>, %arg7: memref<1x1x32xf32, #tpu.memory_space<vmem>>, %arg8: memref<1x1x32xf32, #tpu.memory_space<vmem>>, %arg9: memref<1x1x32xf32, #tpu.memory_space<vmem>>, %arg10: memref<1x32x128xbf16, #tpu.memory_space<vmem>>, %arg11: memref<1x1x128xf32, #tpu.memory_space<vmem>>, %arg12: memref<1x128x32xbf16, #tpu.memory_space<vmem>>, %arg13: memref<1x1x32xf32, #tpu.memory_space<vmem>>, %arg14: memref<2x8x32xf32, #tpu.memory_space<vmem>>) attributes {dimension_semantics = [#tpu.dimension_semantics<arbitrary>], iteration_bounds = array<i64: 2>, scalar_prefetch = 0 : i64, scratch_operands = 0 : i64, tpu.core_type = #tpu.core_type<tc>, window_params = [{pipeline_mode = #tpu.pipeline_mode<synchronous>, transform_indices = @transform_0, window_bounds = array<i64: 2, 8, 32>}, {transform_indices = @transform_1, window_bounds = array<i64: 1, 1, 32>}, {transform_indices = @transform_2, window_bounds = array<i64: 1, 1, 32>}, {transform_indices = @transform_3, window_bounds = array<i64: 1, 32, 96>}, {transform_indices = @transform_4, window_bounds = array<i64: 1, 1, 96>}, {transform_indices = @transform_5, window_bounds = array<i64: 1, 32, 32>}, {transform_indices = @transform_6, window_bounds = array<i64: 1, 1, 32>}, {transform_indices = @transform_7, window_bounds = array<i64: 1, 1, 32>}, {transform_indices = @transform_8, window_bounds = array<i64: 1, 1, 32>}, {transform_indices = @transform_9, window_bounds = array<i64: 1, 32, 128>}, {transform_indices = @transform_10, window_bounds = array<i64: 1, 1, 128>}, {transform_indices = @transform_11, window_bounds = array<i64: 1, 128, 32>}, {transform_indices = @transform_12, window_bounds = array<i64: 1, 1, 32>}, {pipeline_mode = #tpu.pipeline_mode<synchronous>, transform_indices = @transform_13, window_bounds = array<i64: 2, 8, 32>}]} {
    %c0_i32 = arith.constant 0 : i32
    %0 = arith.cmpi eq, %arg0, %c0_i32 : i32
    %1 = arith.extui %0 : i1 to i32
    %c0_i32_0 = arith.constant 0 : i32
    %2 = arith.cmpi ne, %1, %c0_i32_0 : i32
    scf.if %2 {
      %c0_62 = arith.constant 0 : index
      %c0_63 = arith.constant 0 : index
      %c0_64 = arith.constant 0 : index
      %152 = vector.load %arg1[%c0_62, %c0_63, %c0_64] : memref<2x8x32xf32, #tpu.memory_space<vmem>>, vector<2x8x32xf32>
      %c0_65 = arith.constant 0 : index
      %c0_66 = arith.constant 0 : index
      %c0_67 = arith.constant 0 : index
      %153 = vector.load %arg14[%c0_65, %c0_66, %c0_67] : memref<2x8x32xf32, #tpu.memory_space<vmem>>, vector<2x8x32xf32>
      tpu.vector_store %arg14[%c0_65, %c0_66, %c0_67], %152 {strides = array<i32>} : memref<2x8x32xf32, #tpu.memory_space<vmem>>, vector<2x8x32xf32>,
    } else {
    }
    %c0 = arith.constant 0 : index
    %c0_1 = arith.constant 0 : index
    %c0_2 = arith.constant 0 : index
    %3 = vector.load %arg14[%c0, %c0_1, %c0_2] : memref<2x8x32xf32, #tpu.memory_space<vmem>>, vector<2x8x32xf32>
    %c0_3 = arith.constant 0 : index
    %c0_4 = arith.constant 0 : index
    %c0_5 = arith.constant 0 : index
    %4 = vector.load %arg2[%c0_3, %c0_4, %c0_5] : memref<1x1x32xf32, #tpu.memory_space<vmem>>, vector<1x1x32xf32>
    %5 = vector.shape_cast %4 : vector<1x1x32xf32> to vector<1x32xf32>
    %c0_6 = arith.constant 0 : index
    %c0_7 = arith.constant 0 : index
    %c0_8 = arith.constant 0 : index
    %6 = vector.load %arg3[%c0_6, %c0_7, %c0_8] : memref<1x1x32xf32, #tpu.memory_space<vmem>>, vector<1x1x32xf32>
    %7 = vector.shape_cast %6 : vector<1x1x32xf32> to vector<1x32xf32>
    %cst = arith.constant dense<0.000000e+00> : vector<2x8xf32>
    %8 = vector.multi_reduction <add>, %3, %cst [2] : vector<2x8x32xf32> to vector<2x8xf32>
    %9 = vector.shape_cast %8 : vector<2x8xf32> to vector<2x8x1xf32>
    %cst_9 = arith.constant 3.200000e+01 : f32
    %10 = vector.broadcast %cst_9 : f32 to vector<2x8x1xf32>
    %11 = arith.divf %9, %10 : vector<2x8x1xf32>
    %12 = vector.broadcast %11 : vector<2x8x1xf32> to vector<2x8x32xf32>
    %13 = arith.subf %3, %12 : vector<2x8x32xf32>
    %14 = arith.mulf %13, %13 : vector<2x8x32xf32>
    %cst_10 = arith.constant dense<0.000000e+00> : vector<2x8xf32>
    %15 = vector.multi_reduction <add>, %14, %cst_10 [2] : vector<2x8x32xf32> to vector<2x8xf32>
    %16 = vector.shape_cast %15 : vector<2x8xf32> to vector<2x8x1xf32>
    %cst_11 = arith.constant 3.200000e+01 : f32
    %17 = vector.broadcast %cst_11 : f32 to vector<2x8x1xf32>
    %18 = arith.divf %16, %17 : vector<2x8x1xf32>
    %19 = vector.broadcast %11 : vector<2x8x1xf32> to vector<2x8x32xf32>
    %20 = arith.subf %3, %19 : vector<2x8x32xf32>
    %cst_12 = arith.constant 9.99999974E-6 : f32
    %21 = vector.broadcast %cst_12 : f32 to vector<2x8x1xf32>
    %22 = arith.addf %18, %21 : vector<2x8x1xf32>
    %23 = math.rsqrt %22 : vector<2x8x1xf32>
    %24 = vector.broadcast %23 : vector<2x8x1xf32> to vector<2x8x32xf32>
    %25 = arith.mulf %20, %24 : vector<2x8x32xf32>
    %26 = vector.shape_cast %5 : vector<1x32xf32> to vector<1x1x32xf32>
    %27 = vector.broadcast %26 : vector<1x1x32xf32> to vector<2x8x32xf32>
    %28 = arith.mulf %25, %27 : vector<2x8x32xf32>
    %29 = vector.shape_cast %7 : vector<1x32xf32> to vector<1x1x32xf32>
    %30 = vector.broadcast %29 : vector<1x1x32xf32> to vector<2x8x32xf32>
    %31 = arith.addf %28, %30 : vector<2x8x32xf32>
    %32 = vector.shape_cast %31 : vector<2x8x32xf32> to vector<16x32xf32>
    %33 = arith.truncf %32 : vector<16x32xf32> to vector<16x32xbf16>
    %c0_13 = arith.constant 0 : index
    %c0_14 = arith.constant 0 : index
    %c0_15 = arith.constant 0 : index
    %34 = vector.load %arg4[%c0_13, %c0_14, %c0_15] : memref<1x32x96xbf16, #tpu.memory_space<vmem>>, vector<1x32x96xbf16>
    %35 = vector.shape_cast %34 : vector<1x32x96xbf16> to vector<32x96xbf16>
    %cst_16 = arith.constant dense<0.000000e+00> : vector<16x96xf32>
    %36 = tpu.matmul %33, %35, %cst_16 {dimension_numbers = #tpu.dot_dimension_numbers<[1], [0], [0], [1], [0, 0, 1, 1], [], []>} : vector<16x32xbf16>, vector<32x96xbf16>, vector<16x96xf32> -> vector<16x96xf32>
    %c0_17 = arith.constant 0 : index
    %c0_18 = arith.constant 0 : index
    %c0_19 = arith.constant 0 : index
    %37 = vector.load %arg5[%c0_17, %c0_18, %c0_19] : memref<1x1x96xf32, #tpu.memory_space<vmem>>, vector<1x1x96xf32>
    %38 = vector.shape_cast %37 : vector<1x1x96xf32> to vector<1x96xf32>
    %39 = vector.broadcast %38 : vector<1x96xf32> to vector<16x96xf32>
    %40 = arith.addf %36, %39 : vector<16x96xf32>
    %41 = vector.extract_strided_slice %40 {offsets = [0, 0], sizes = [16, 32], strides = [1, 1]} : vector<16x96xf32> to vector<16x32xf32>
    %cst_20 = arith.constant 0.353553385 : f32
    %42 = vector.broadcast %cst_20 : f32 to vector<16x32xf32>
    %43 = arith.mulf %41, %42 : vector<16x32xf32>
    %44 = vector.shape_cast %43 : vector<16x32xf32> to vector<2x8x32xf32>
    %45 = vector.extract_strided_slice %40 {offsets = [0, 32], sizes = [16, 32], strides = [1, 1]} : vector<16x96xf32> to vector<16x32xf32>
    %46 = vector.shape_cast %45 : vector<16x32xf32> to vector<2x8x32xf32>
    %47 = vector.extract_strided_slice %40 {offsets = [0, 64], sizes = [16, 32], strides = [1, 1]} : vector<16x96xf32> to vector<16x32xf32>
    %48 = vector.shape_cast %47 : vector<16x32xf32> to vector<2x8x32xf32>
    %49 = vector.extract_strided_slice %44 {offsets = [0, 0, 0], sizes = [2, 8, 8], strides = [1, 1, 1]} : vector<2x8x32xf32> to vector<2x8x8xf32>
    %50 = vector.extract_strided_slice %44 {offsets = [0, 0, 8], sizes = [2, 8, 8], strides = [1, 1, 1]} : vector<2x8x32xf32> to vector<2x8x8xf32>
    %51 = vector.extract_strided_slice %44 {offsets = [0, 0, 16], sizes = [2, 8, 8], strides = [1, 1, 1]} : vector<2x8x32xf32> to vector<2x8x8xf32>
    %52 = vector.extract_strided_slice %44 {offsets = [0, 0, 24], sizes = [2, 8, 8], strides = [1, 1, 1]} : vector<2x8x32xf32> to vector<2x8x8xf32>
    %53 = tpu.concatenate %49, %50, %51, %52 in 0 : vector<2x8x8xf32>, vector<2x8x8xf32>, vector<2x8x8xf32>, vector<2x8x8xf32> -> vector<8x8x8xf32>
    %54 = arith.truncf %53 : vector<8x8x8xf32> to vector<8x8x8xbf16>
    %55 = vector.extract_strided_slice %46 {offsets = [0, 0, 0], sizes = [2, 8, 8], strides = [1, 1, 1]} : vector<2x8x32xf32> to vector<2x8x8xf32>
    %56 = vector.extract_strided_slice %46 {offsets = [0, 0, 8], sizes = [2, 8, 8], strides = [1, 1, 1]} : vector<2x8x32xf32> to vector<2x8x8xf32>
    %57 = vector.extract_strided_slice %46 {offsets = [0, 0, 16], sizes = [2, 8, 8], strides = [1, 1, 1]} : vector<2x8x32xf32> to vector<2x8x8xf32>
    %58 = vector.extract_strided_slice %46 {offsets = [0, 0, 24], sizes = [2, 8, 8], strides = [1, 1, 1]} : vector<2x8x32xf32> to vector<2x8x8xf32>
    %59 = tpu.concatenate %55, %56, %57, %58 in 0 : vector<2x8x8xf32>, vector<2x8x8xf32>, vector<2x8x8xf32>, vector<2x8x8xf32> -> vector<8x8x8xf32>
    %60 = arith.truncf %59 : vector<8x8x8xf32> to vector<8x8x8xbf16>
    %61 = vector.extract_strided_slice %48 {offsets = [0, 0, 0], sizes = [2, 8, 8], strides = [1, 1, 1]} : vector<2x8x32xf32> to vector<2x8x8xf32>
    %62 = vector.extract_strided_slice %48 {offsets = [0, 0, 8], sizes = [2, 8, 8], strides = [1, 1, 1]} : vector<2x8x32xf32> to vector<2x8x8xf32>
    %63 = vector.extract_strided_slice %48 {offsets = [0, 0, 16], sizes = [2, 8, 8], strides = [1, 1, 1]} : vector<2x8x32xf32> to vector<2x8x8xf32>
    %64 = vector.extract_strided_slice %48 {offsets = [0, 0, 24], sizes = [2, 8, 8], strides = [1, 1, 1]} : vector<2x8x32xf32> to vector<2x8x8xf32>
    %65 = tpu.concatenate %61, %62, %63, %64 in 0 : vector<2x8x8xf32>, vector<2x8x8xf32>, vector<2x8x8xf32>, vector<2x8x8xf32> -> vector<8x8x8xf32>
    %66 = arith.truncf %65 : vector<8x8x8xf32> to vector<8x8x8xbf16>
    "tpu.trace_start"() <{level = 10 : i32, message = "bqd,bkd->bqk"}> : () -> ()
    %cst_21 = arith.constant dense<0.000000e+00> : vector<8x8x8xf32>
    %67 = tpu.matmul %54, %60, %cst_21 {dimension_numbers = #tpu.dot_dimension_numbers<[2], [2], [1], [1], [0, 0, 0, 1, 1, 1], [0], [0]>} : vector<8x8x8xbf16>, vector<8x8x8xbf16>, vector<8x8x8xf32> -> vector<8x8x8xf32>
    "tpu.trace_stop"() : () -> ()
    %cst_22 = arith.constant dense<0xFF800000> : vector<8x8xf32>
    %68 = vector.multi_reduction <maximumf>, %67, %cst_22 [2] : vector<8x8x8xf32> to vector<8x8xf32>
    %69 = vector.shape_cast %68 : vector<8x8xf32> to vector<8x8x1xf32>
    %70 = vector.broadcast %69 : vector<8x8x1xf32> to vector<8x8x8xf32>
    %71 = arith.subf %67, %70 : vector<8x8x8xf32>
    %72 = math.exp %71 : vector<8x8x8xf32>
    %cst_23 = arith.constant dense<0.000000e+00> : vector<8x8xf32>
    %73 = vector.multi_reduction <add>, %72, %cst_23 [2] : vector<8x8x8xf32> to vector<8x8xf32>
    %74 = vector.shape_cast %73 : vector<8x8xf32> to vector<8x8x1xf32>
    %75 = tpu.reciprocal %74 {approx = true} : vector<8x8x1xf32> -> vector<8x8x1xf32>
    %76 = vector.broadcast %75 : vector<8x8x1xf32> to vector<8x8x8xf32>
    %77 = arith.mulf %72, %76 : vector<8x8x8xf32>
    %78 = arith.truncf %77 : vector<8x8x8xf32> to vector<8x8x8xbf16>
    "tpu.trace_start"() <{level = 10 : i32, message = "bqk,bkd->bqd"}> : () -> ()
    %cst_24 = arith.constant dense<0.000000e+00> : vector<8x8x8xf32>
    %79 = tpu.matmul %78, %66, %cst_24 {dimension_numbers = #tpu.dot_dimension_numbers<[2], [1], [1], [2], [0, 0, 0, 1, 1, 2], [0], [0]>} : vector<8x8x8xbf16>, vector<8x8x8xbf16>, vector<8x8x8xf32> -> vector<8x8x8xf32>
    "tpu.trace_stop"() : () -> ()
    %80 = vector.extract_strided_slice %79 {offsets = [0, 0, 0], sizes = [2, 8, 8], strides = [1, 1, 1]} : vector<8x8x8xf32> to vector<2x8x8xf32>
    %81 = vector.extract_strided_slice %79 {offsets = [2, 0, 0], sizes = [2, 8, 8], strides = [1, 1, 1]} : vector<8x8x8xf32> to vector<2x8x8xf32>
    %82 = vector.extract_strided_slice %79 {offsets = [4, 0, 0], sizes = [2, 8, 8], strides = [1, 1, 1]} : vector<8x8x8xf32> to vector<2x8x8xf32>
    %83 = vector.extract_strided_slice %79 {offsets = [6, 0, 0], sizes = [2, 8, 8], strides = [1, 1, 1]} : vector<8x8x8xf32> to vector<2x8x8xf32>
    %84 = tpu.concatenate %80, %81, %82, %83 in 2 : vector<2x8x8xf32>, vector<2x8x8xf32>, vector<2x8x8xf32>, vector<2x8x8xf32> -> vector<2x8x32xf32>
    %85 = vector.shape_cast %84 : vector<2x8x32xf32> to vector<16x32xf32>
    %86 = arith.truncf %85 : vector<16x32xf32> to vector<16x32xbf16>
    %c0_25 = arith.constant 0 : index
    %c0_26 = arith.constant 0 : index
    %c0_27 = arith.constant 0 : index
    %87 = vector.load %arg6[%c0_25, %c0_26, %c0_27] : memref<1x32x32xbf16, #tpu.memory_space<vmem>>, vector<1x32x32xbf16>
    %88 = vector.shape_cast %87 : vector<1x32x32xbf16> to vector<32x32xbf16>
    %cst_28 = arith.constant dense<0.000000e+00> : vector<16x32xf32>
    %89 = tpu.matmul %86, %88, %cst_28 {dimension_numbers = #tpu.dot_dimension_numbers<[1], [0], [0], [1], [0, 0, 1, 1], [], []>} : vector<16x32xbf16>, vector<32x32xbf16>, vector<16x32xf32> -> vector<16x32xf32>
    %c0_29 = arith.constant 0 : index
    %c0_30 = arith.constant 0 : index
    %c0_31 = arith.constant 0 : index
    %90 = vector.load %arg7[%c0_29, %c0_30, %c0_31] : memref<1x1x32xf32, #tpu.memory_space<vmem>>, vector<1x1x32xf32>
    %91 = vector.shape_cast %90 : vector<1x1x32xf32> to vector<1x32xf32>
    %92 = vector.broadcast %91 : vector<1x32xf32> to vector<16x32xf32>
    %93 = arith.addf %89, %92 : vector<16x32xf32>
    %94 = vector.shape_cast %93 : vector<16x32xf32> to vector<2x8x32xf32>
    %95 = arith.addf %3, %94 : vector<2x8x32xf32>
    %c0_32 = arith.constant 0 : index
    %c0_33 = arith.constant 0 : index
    %c0_34 = arith.constant 0 : index
    %96 = vector.load %arg8[%c0_32, %c0_33, %c0_34] : memref<1x1x32xf32, #tpu.memory_space<vmem>>, vector<1x1x32xf32>
    %97 = vector.shape_cast %96 : vector<1x1x32xf32> to vector<1x32xf32>
    %c0_35 = arith.constant 0 : index
    %c0_36 = arith.constant 0 : index
    %c0_37 = arith.constant 0 : index
    %98 = vector.load %arg9[%c0_35, %c0_36, %c0_37] : memref<1x1x32xf32, #tpu.memory_space<vmem>>, vector<1x1x32xf32>
    %99 = vector.shape_cast %98 : vector<1x1x32xf32> to vector<1x32xf32>
    %cst_38 = arith.constant dense<0.000000e+00> : vector<2x8xf32>
    %100 = vector.multi_reduction <add>, %95, %cst_38 [2] : vector<2x8x32xf32> to vector<2x8xf32>
    %101 = vector.shape_cast %100 : vector<2x8xf32> to vector<2x8x1xf32>
    %cst_39 = arith.constant 3.200000e+01 : f32
    %102 = vector.broadcast %cst_39 : f32 to vector<2x8x1xf32>
    %103 = arith.divf %101, %102 : vector<2x8x1xf32>
    %104 = vector.broadcast %103 : vector<2x8x1xf32> to vector<2x8x32xf32>
    %105 = arith.subf %95, %104 : vector<2x8x32xf32>
    %106 = arith.mulf %105, %105 : vector<2x8x32xf32>
    %cst_40 = arith.constant dense<0.000000e+00> : vector<2x8xf32>
    %107 = vector.multi_reduction <add>, %106, %cst_40 [2] : vector<2x8x32xf32> to vector<2x8xf32>
    %108 = vector.shape_cast %107 : vector<2x8xf32> to vector<2x8x1xf32>
    %cst_41 = arith.constant 3.200000e+01 : f32
    %109 = vector.broadcast %cst_41 : f32 to vector<2x8x1xf32>
    %110 = arith.divf %108, %109 : vector<2x8x1xf32>
    %111 = vector.broadcast %103 : vector<2x8x1xf32> to vector<2x8x32xf32>
    %112 = arith.subf %95, %111 : vector<2x8x32xf32>
    %cst_42 = arith.constant 9.99999974E-6 : f32
    %113 = vector.broadcast %cst_42 : f32 to vector<2x8x1xf32>
    %114 = arith.addf %110, %113 : vector<2x8x1xf32>
    %115 = math.rsqrt %114 : vector<2x8x1xf32>
    %116 = vector.broadcast %115 : vector<2x8x1xf32> to vector<2x8x32xf32>
    %117 = arith.mulf %112, %116 : vector<2x8x32xf32>
    %118 = vector.shape_cast %97 : vector<1x32xf32> to vector<1x1x32xf32>
    %119 = vector.broadcast %118 : vector<1x1x32xf32> to vector<2x8x32xf32>
    %120 = arith.mulf %117, %119 : vector<2x8x32xf32>
    %121 = vector.shape_cast %99 : vector<1x32xf32> to vector<1x1x32xf32>
    %122 = vector.broadcast %121 : vector<1x1x32xf32> to vector<2x8x32xf32>
    %123 = arith.addf %120, %122 : vector<2x8x32xf32>
    %124 = vector.shape_cast %123 : vector<2x8x32xf32> to vector<16x32xf32>
    %125 = arith.truncf %124 : vector<16x32xf32> to vector<16x32xbf16>
    %c0_43 = arith.constant 0 : index
    %c0_44 = arith.constant 0 : index
    %c0_45 = arith.constant 0 : index
    %126 = vector.load %arg10[%c0_43, %c0_44, %c0_45] : memref<1x32x128xbf16, #tpu.memory_space<vmem>>, vector<1x32x128xbf16>
    %127 = vector.shape_cast %126 : vector<1x32x128xbf16> to vector<32x128xbf16>
    %cst_46 = arith.constant dense<0.000000e+00> : vector<16x128xf32>
    %128 = tpu.matmul %125, %127, %cst_46 {dimension_numbers = #tpu.dot_dimension_numbers<[1], [0], [0], [1], [0, 0, 1, 1], [], []>} : vector<16x32xbf16>, vector<32x128xbf16>, vector<16x128xf32> -> vector<16x128xf32>
    %c0_47 = arith.constant 0 : index
    %c0_48 = arith.constant 0 : index
    %c0_49 = arith.constant 0 : index
    %129 = vector.load %arg11[%c0_47, %c0_48, %c0_49] : memref<1x1x128xf32, #tpu.memory_space<vmem>>, vector<1x1x128xf32>
    %130 = vector.shape_cast %129 : vector<1x1x128xf32> to vector<1x128xf32>
    %131 = vector.broadcast %130 : vector<1x128xf32> to vector<16x128xf32>
    %132 = arith.addf %128, %131 : vector<16x128xf32>
    %cst_50 = arith.constant 1.702000e+00 : f32
    %133 = vector.broadcast %cst_50 : f32 to vector<16x128xf32>
    %134 = arith.mulf %133, %132 : vector<16x128xf32>
    %135 = arith.negf %134 : vector<16x128xf32>
    %136 = math.exp %135 : vector<16x128xf32>
    %cst_51 = arith.constant 1.000000e+00 : f32
    %137 = vector.broadcast %cst_51 : f32 to vector<16x128xf32>
    %138 = arith.addf %137, %136 : vector<16x128xf32>
    %139 = arith.divf %137, %138 : vector<16x128xf32>
    %140 = arith.mulf %132, %139 : vector<16x128xf32>
    %141 = arith.truncf %140 : vector<16x128xf32> to vector<16x128xbf16>
    %c0_52 = arith.constant 0 : index
    %c0_53 = arith.constant 0 : index
    %c0_54 = arith.constant 0 : index
    %142 = vector.load %arg12[%c0_52, %c0_53, %c0_54] : memref<1x128x32xbf16, #tpu.memory_space<vmem>>, vector<1x128x32xbf16>
    %143 = vector.shape_cast %142 : vector<1x128x32xbf16> to vector<128x32xbf16>
    %cst_55 = arith.constant dense<0.000000e+00> : vector<16x32xf32>
    %144 = tpu.matmul %141, %143, %cst_55 {dimension_numbers = #tpu.dot_dimension_numbers<[1], [0], [0], [1], [0, 0, 1, 1], [], []>} : vector<16x128xbf16>, vector<128x32xbf16>, vector<16x32xf32> -> vector<16x32xf32>
    %c0_56 = arith.constant 0 : index
    %c0_57 = arith.constant 0 : index
    %c0_58 = arith.constant 0 : index
    %145 = vector.load %arg13[%c0_56, %c0_57, %c0_58] : memref<1x1x32xf32, #tpu.memory_space<vmem>>, vector<1x1x32xf32>
    %146 = vector.shape_cast %145 : vector<1x1x32xf32> to vector<1x32xf32>
    %147 = vector.broadcast %146 : vector<1x32xf32> to vector<16x32xf32>
    %148 = arith.addf %144, %147 : vector<16x32xf32>
    %149 = vector.shape_cast %148 : vector<16x32xf32> to vector<2x8x32xf32>
    %150 = arith.addf %95, %149 : vector<2x8x32xf32>
    %c0_59 = arith.constant 0 : index
    %c0_60 = arith.constant 0 : index
    %c0_61 = arith.constant 0 : index
    %151 = vector.load %arg14[%c0_59, %c0_60, %c0_61] : memref<2x8x32xf32, #tpu.memory_space<vmem>>, vector<2x8x32xf32>
    tpu.vector_store %arg14[%c0_59, %c0_60, %c0_61], %150 {strides = array<i32>} : memref<2x8x32xf32, #tpu.memory_space<vmem>>, vector<2x8x32xf32>,
    return
  }
  func.func @transform_0(%arg0: i32) -> (i32, i32, i32) {
    %c0_i32 = arith.constant 0 : i32
    %c0_i32_0 = arith.constant 0 : i32
    %c0_i32_1 = arith.constant 0 : i32
    %c0_i32_2 = arith.constant 0 : i32
    return %c0_i32, %c0_i32_0, %c0_i32_1 : i32, i32, i32
  }
  func.func @transform_1(%arg0: i32) -> (i32, i32, i32) {
    %c0_i32 = arith.constant 0 : i32
    %c0_i32_0 = arith.constant 0 : i32
    %c0_i32_1 = arith.constant 0 : i32
    return %arg0, %c0_i32, %c0_i32_0 : i32, i32, i32
  }
  func.func @transform_2(%arg0: i32) -> (i32, i32, i32) {
    %c0_i32 = arith.constant 0 : i32
    %c0_i32_0 = arith.constant 0 : i32
    %c0_i32_1 = arith.constant 0 : i32
    return %arg0, %c0_i32, %c0_i32_0 : i32, i32, i32
  }
  func.func @transform_3(%arg0: i32) -> (i32, i32, i32) {
    %c0_i32 = arith.constant 0 : i32
    %c0_i32_0 = arith.constant 0 : i32
    %c0_i32_1 = arith.constant 0 : i32
    return %arg0, %c0_i32, %c0_i32_0 : i32, i32, i32
  }
  func.func @transform_4(%arg0: i32) -> (i32, i32, i32) {
    %c0_i32 = arith.constant 0 : i32
    %c0_i32_0 = arith.constant 0 : i32
    %c0_i32_1 = arith.constant 0 : i32
    return %arg0, %c0_i32, %c0_i32_0 : i32, i32, i32
  }
  func.func @transform_5(%arg0: i32) -> (i32, i32, i32) {
    %c0_i32 = arith.constant 0 : i32
    %c0_i32_0 = arith.constant 0 : i32
    %c0_i32_1 = arith.constant 0 : i32
    return %arg0, %c0_i32, %c0_i32_0 : i32, i32, i32
  }
  func.func @transform_6(%arg0: i32) -> (i32, i32, i32) {
    %c0_i32 = arith.constant 0 : i32
    %c0_i32_0 = arith.constant 0 : i32
    %c0_i32_1 = arith.constant 0 : i32
    return %arg0, %c0_i32, %c0_i32_0 : i32, i32, i32
  }
  func.func @transform_7(%arg0: i32) -> (i32, i32, i32) {
    %c0_i32 = arith.constant 0 : i32
    %c0_i32_0 = arith.constant 0 : i32
    %c0_i32_1 = arith.constant 0 : i32
    return %arg0, %c0_i32, %c0_i32_0 : i32, i32, i32
  }
  func.func @transform_8(%arg0: i32) -> (i32, i32, i32) {
    %c0_i32 = arith.constant 0 : i32
    %c0_i32_0 = arith.constant 0 : i32
    %c0_i32_1 = arith.constant 0 : i32
    return %arg0, %c0_i32, %c0_i32_0 : i32, i32, i32
  }
  func.func @transform_9(%arg0: i32) -> (i32, i32, i32) {
    %c0_i32 = arith.constant 0 : i32
    %c0_i32_0 = arith.constant 0 : i32
    %c0_i32_1 = arith.constant 0 : i32
    return %arg0, %c0_i32, %c0_i32_0 : i32, i32, i32
  }
  func.func @transform_10(%arg0: i32) -> (i32, i32, i32) {
    %c0_i32 = arith.constant 0 : i32
    %c0_i32_0 = arith.constant 0 : i32
    %c0_i32_1 = arith.constant 0 : i32
    return %arg0, %c0_i32, %c0_i32_0 : i32, i32, i32
  }
  func.func @transform_11(%arg0: i32) -> (i32, i32, i32) {
    %c0_i32 = arith.constant 0 : i32
    %c0_i32_0 = arith.constant 0 : i32
    %c0_i32_1 = arith.constant 0 : i32
    return %arg0, %c0_i32, %c0_i32_0 : i32, i32, i32
  }
  func.func @transform_12(%arg0: i32) -> (i32, i32, i32) {
    %c0_i32 = arith.constant 0 : i32
    %c0_i32_0 = arith.constant 0 : i32
    %c0_i32_1 = arith.constant 0 : i32
    return %arg0, %c0_i32, %c0_i32_0 : i32, i32, i32
  }
  func.func @transform_13(%arg0: i32) -> (i32, i32, i32) {
    %c0_i32 = arith.constant 0 : i32
    %c0_i32_0 = arith.constant 0 : i32
    %c0_i32_1 = arith.constant 0 : i32
    %c0_i32_2 = arith.constant 0 : i32
    return %c0_i32, %c0_i32_0, %c0_i32_1 : i32, i32, i32
  }
}

</mosaic_0001>

<bundles_post_ra>
// kernel: tpu_custom_call.1
= control target key start
LH: loop header
LB: loop body
LE: loop exit
PB: predicated region body
PF: predicated region fallthrough
CT: control target
= control target key end

     0   :  { %s3153_s0 = inlined_call_operand.hbm [shape: f32[2,8,32], index: 0, kind: input, shape index: {}, may-alias: {0,13}]   ;;  %s3154_s1 = inlined_call_operand.vmem [shape: f32[2,1,32], index: 1, kind: input, shape index: {}]   ;;  %s3155_s2 = inlined_call_operand.vmem [shape: f32[2,1,32], index: 2, kind: input, shape index: {}]   ;;  %s3156_s3 = inlined_call_operand.vmem [shape: bf16[2,32,96], index: 3, kind: input, shape index: {}]   ;;  %s3157_s4 = inlined_call_operand.vmem [shape: f32[2,1,96], index: 4, kind: input, shape index: {}]   ;;  %s3158_s5 = inlined_call_operand.vmem [shape: bf16[2,32,32], index: 5, kind: input, shape index: {}]   ;;  %s3159_s6 = inlined_call_operand.vmem [shape: f32[2,1,32], index: 6, kind: input, shape index: {}]   ;;  %s3160_s7 = inlined_call_operand.vmem [shape: f32[2,1,32], index: 7, kind: input, shape index: {}]   ;;  %s3161_s8 = inlined_call_operand.vmem [shape: f32[2,1,32], index: 8, kind: input, shape index: {}]   ;;  %s3162_s9 = inlined_call_operand.vmem [shape: bf16[2,32,128], index: 9, kind: input, shape index: {}]   ;;  %s3163_s10 = inlined_call_operand.vmem [shape: f32[2,1,128], index: 10, kind: input, shape index: {}]   ;;  %s3164_s11 = inlined_call_operand.vmem [shape: bf16[2,128,32], index: 11, kind: input, shape index: {}]   ;;  %s3165_s12 = inlined_call_operand.vmem [shape: f32[2,1,32], index: 12, kind: input, shape index: {}]   ;;  %s3166_s13 = inlined_call_operand.hbm [shape: f32[2,8,32], index: 13, kind: output, shape index: {}, may-alias: {0,13}]  }
   0x1   :  { %3168 = sst [smem:[#allocation9_spill]] %s3153_s0 }
   0x2   :  { %3169 = sst [smem:[#allocation10_spill]] %s3156_s3 }
   0x3   :  { %3170 = sst [smem:[#allocation11_spill]] %s3158_s5 }
   0x4   :  { %3171 = sst [smem:[#allocation12_spill]] %s3166_s13 }
   0x5   :  { %18 = vsyncpa [#allocation3], 0 }
   0x6   :  { %19 = vsyncpa [#allocation4], 0  ;;  %s2740_s25 = smov 0  }
   0x7 LB: > { %3172 = sst [smem:[#allocation8_spill]] %s2653_s25  ;;  %s2746_s26 = sadd.s32 4294967295, %s2653_s25   ;;  %s2653_s25 = sphi %s2740_s25, %s25_s25  }
   0x8   : > { %p2188_p0 = scmp.ge.s32.totalorder %s2653_s25, 1  ;;  %p384_p1 = scmp.lt.s32.totalorder %s2653_s25, 3 }
   0x9   : > { %s2655_s27 = smov [#allocation2]   ;;  %p2455_p4 = scmp.eq.s32.totalorder %s2746_s26, 0 }
   0xa   : > { %s396_s28 = sshll.u32 %s2655_s27, 4  ;;  %p2751_p3 = pnand %p2188_p0, %p384_p1  ;;  %s397_s28 = int_to_ptr.vmem [resolvable:$true] %s396_s28 }
   0xb   : > { %s2600_s30 = scalar_lea.vmem %s397_s28, 256  ;;  %p2608_p11 = scmp.lt.s32.totalorder %s397_s28, %s397_s28 }
   0xc   : > { %p2451_p5 = pneg %p2751_p3  ;;  %p2601_p8 = scmp.ne.s32.totalorder %s397_s28, %s2600_s30 }
   0xd   : > { %p2609_p12 = scmp.lt.s32.totalorder %s2600_s30, %s2600_s30 }
   0xe   : > { %p2452_p6 = pnand %p2455_p4, %p2451_p5 }
   0xf   : > { %p2610_p13 = por %p2609_p12, %p2608_p11 }
  0x10   : > { %p2591_p7 = pneg %p2452_p6 }
  0x12   : > { %p2603_p9 = pnand %p2601_p8, %p2591_p7 }
  0x14   : > { %p2604_p10 = pneg %p2603_p9 }
  0x16   : > { %p2611_p2 = pnand %p2610_p13, %p2604_p10 }
  0x18   : > { %2614 = shalt.err (!%p2611_p2)
}
  0x19   : > { %s2656_s14 = smov 128   ;;  %s2657_s15 = smov 8  }
  0x1a   : > { %s3174_s0 = sld [smem:[#allocation9_spill]] }
  0x1c   : > { %492 = sbr.rel (%p2751_p3) target bundleno = 2661 (0xa65), region = 72 }
  0x20   : > { %2454 = dma.hbm_to_vmem [thread:$0]  (!%p2452_p6), %s3174_s0, 256, %s397_s28, [#allocation3], %s2656_s14, %s2656_s14, %s2657_s15  }
  0x21   : > { %2644 = dma.done.wait (%p2455_p4), [#allocation3], 256  }
  0x22   : > { %2646 = vsyncadd (%p2455_p4), [#allocation3], 4294967040  ;;  %p570_p0 = scmp.lt.s32.totalorder %s2746_s26, 1  ;;  %s3175_s3 = sld [smem:[#allocation10_spill]] }
  0x23   : > { %s3176_s5 = sld [smem:[#allocation11_spill]]  ;;  %p3177_p1 = scmp.ne.s32.totalorder %s2746_s26, 0 }
  0x24   : > { %s2771_s18 = scalar_select %p570_p0, %s2746_s26, 1 }
  0x26   : > { %s2249_s27 = sshll.u32 %s2771_s18, 4  ;;  %s594_s25 = scalar_lea.vmem %s3160_s7, %s2771_s18 }
  0x27   : > { %s597_s30 = scalar_lea.vmem %s3161_s8, %s2771_s18  ;;  %s2252_s13 = sshll.u32 %s2771_s18, 6 }
  0x28   : > { %s2789_s16 = scalar_lea.vmem %s3175_s3, %s2249_s27  ;;  %s2811_s3 = scalar_lea.vmem %s3162_s9, %s2249_s27 }
  0x29   : > { %s2794_s20 = scalar_lea.vmem %s3176_s5, %s2249_s27  ;;  %s605_s5 = scalar_lea.vmem %s3163_s10, %s2771_s18 }
  0x2a   : > { %s2821_s22 = scalar_lea.vmem %s3164_s11, %s2252_s13  ;;  %s613_s28 = scalar_lea.vmem %s3165_s12, %s2771_s18 }
  0x2b   : > { %618 = sbr.rel (%p3177_p1) target bundleno = 50 (0x32), region = 80 }
  0x30   : > { %v619_v0 = vld [vmem:[#allocation2] sm:$0xff]  ;;  %vm621_vm0 = vcmask 261120   ;;  %v620_v1 = vld [vmem:[#allocation2 + $0x8] sm:$0xff] }
  0x31   : > { %622 = vst.msk [vmem:[#allocation5] sm:$0xff] %vm621_vm0, %v619_v0  ;;  %623 = vst.msk [vmem:[#allocation5 + $0x8] sm:$0xff] %vm621_vm0, %v620_v1 }
  0x32 PF: > { %vm628_vm1 = vcmask 261120   ;;  %v2527_v16 = vld [vmem:[%s2789_s16 + $0x8] sm:$0xff]   ;;  %v2658_v17 = vmov 0.0   ;;  %vm2659_vm2 = vmmov 0   ;;  %v2528_v18 = vld [vmem:[%s2789_s16] sm:$0xff]   ;;  %s3178_s16 = scalar_lea.vmem %s3154_s1, %s2771_s18  ;;  %s3179_s15 = scalar_lea.vmem %s3155_s2, %s2771_s18  ;;  %vm801_vm3 = vcmask 64512  }
  0x33   : > { %2303 = vmatprep.subr.bf16.mxu0 %v2658_v17  ;;  %2307 = vmatprep.mubr.msk.bf16.mxu0 %vm2659_vm2, %v2658_v17  ;;  %v2202_v27 = vld [vmem:[%s3178_s16] ss:$0 sm:$0xff]  ;;  %s3180_s0 = scalar_lea.vmem %s3157_s4, %s2771_s18  ;;  %s2660_s21 = smov 112   ;;  %vm1292_vm4 = vcmask 1043456   ;;  %vm1698_vm5 = vcmask 130048   ;;  %vm1701_vm6 = vcmask 195584  }
  0x34   : > { %2304 = vmatpush3.bf16.msra.mxu0 %v2527_v16  ;;  %2323 = vmatprep.subr.bf16.mxu1 %v2658_v17  ;;  %v2203_v31 = vld [vmem:[%s3179_s15] ss:$0 sm:$0xff]  ;;  %s2661_s24 = smov 120   ;;  %s2662_s23 = smov 104  }
  0x35   : > { %2305 = vmatprep.subr.bf16.mxu0 %v2658_v17  ;;  %2325 = vmatprep.mubr.msk.bf16.mxu1 %vm2659_vm2, %v2658_v17  ;;  %v2204_v37 = vld [vmem:[%s3180_s0] ss:$0 sm:$0xff]  ;;  %s2663_s13 = smov 96   ;;  %s2664_s27 = smov 64  }
  0x36   : > { %s2665_s16 = smov 8   ;;  %s2666_s29 = smov 16  }
  0x37   : > { %s2667_s14 = smov 24   ;;  %s3181_s17 = scalar_lea.vmem %s3159_s6, %s2771_s18 }
  0x38   : > { %v2829_v2 = vld [vmem:[#allocation5] sm:$0xff]  ;;  %v2831_v3 = vld [vmem:[#allocation5 + $0x8] sm:$0xff]  ;;  %2306 = vmatpush3.bf16.msra.mxu0 %v2528_v18  ;;  %p2457_p2 = scmp.eq.s32.totalorder %s2746_s26, 1 }
  0x39   : > { %v629_v4 = vsel %vm628_vm1, %v2829_v2, 0.0  ;;  %v632_v5 = vsel %vm628_vm1, %v2831_v3, 0.0  ;;  %2311 = vmatprep.subr.bf16.mxu0 %v2658_v17 }
  0x3a   : > { %630 = vadd.xlane.f32.xlu0 %v629_v4 }
  0x3e   : > { %633 = vadd.xlane.f32.xlu0 %v632_v5 }
  0xc3   : > { %v631_v6 = vpop.xlane.xlu0 %630 }
  0xc4   : > { %v636_v7 = vmul.f32 0.03125, %v631_v6 }
  0xc6   : > { %v638_v8 = vsub.f32 %v2829_v2, %v636_v7 }
  0xc7   : > { %v634_v9 = vpop.xlane.xlu0 %633 }
  0xc8   : > { %v637_v10 = vmul.f32 0.03125, %v634_v9  ;;  %v640_v11 = vmul.f32 %v638_v8, %v638_v8 }
  0xca   : > { %v639_v12 = vsub.f32 %v2831_v3, %v637_v10  ;;  %v642_v13 = vsel %vm628_vm1, %v640_v11, 0.0 }
  0xcb   : > { %643 = vadd.xlane.f32.xlu1 %v642_v13 }
  0xcc   : > { %v641_v14 = vmul.f32 %v639_v12, %v639_v12 }
  0xce   : > { %v645_v15 = vsel %vm628_vm1, %v641_v14, 0.0 }
  0xcf   : > { %646 = vadd.xlane.f32.xlu1 %v645_v15 }
 0x154   : > { %v644_v19 = vpop.xlane.xlu1 %643 }
 0x155   : > { %v648_v20 = vmul.f32 0.03125, %v644_v19 }
 0x157   : > { %v650_v21 = vadd.f32 1e-05, %v648_v20 }
 0x158   : > { %v647_v22 = vpop.xlane.xlu1 %646 }
 0x159   : > { %2541 = vrsqrt.f32 %v650_v21  ;;  %v649_v23 = vmul.f32 0.03125, %v647_v22 }
 0x15b   : > { %v651_v24 = vadd.f32 1e-05, %v649_v23 }
 0x15d   : > { %2543 = vrsqrt.f32 %v651_v24 }
 0x166   : > { %v2542_v25 = vpop.eup %2541 }
 0x167   : > { %v654_v26 = vmul.f32 %v2542_v25, %v638_v8 }
 0x169   : > { %v662_v30 = vmul.f32 %v2202_v27, %v654_v26 }
 0x16a   : > { %v2544_v28 = vpop.eup %2543 }
 0x16b   : > { %v655_v29 = vmul.f32 %v2544_v28, %v639_v12  ;;  %v670_v33 = vadd.f32 %v2203_v31, %v662_v30 }
 0x16d   : > { %v663_v32 = vmul.f32 %v2202_v27, %v655_v29 }
 0x16f   : > { %v671_v34 = vadd.f32 %v2203_v31, %v663_v32 }
 0x171   : > { %v672_v35 = vpack.c.bf16 %v671_v34, %v670_v33 }
 0x173   : > { %2308 = vmatmul.mubr.msk.bf16.vlgmr.msra.gmra.mxu0 %vm628_vm1, %v672_v35 }
 0x174   : > { %2313 = vmatprep.mubr.msk.bf16.mxu0 %vm2659_vm2, %v2658_v17 }
 0x233   : > { %v733_v36 = vpop.f32.mrf.mxu0 }
 0x234   : > { %v734_v39 = vadd.f32 %v2204_v37, %v733_v36 }
 0x235   : > { %v2309_v38 = vpop.f32.mrf.mxu0 }
 0x236   : > { %v740_v44 = vmul.f32 0.35355338, %v734_v39  ;;  %v2875_v48 = vpack.c.bf16 %v734_v39, %v734_v39 }
 0x237   : > { %v736_v40 = vpop.f32.mrf.mxu0 }
 0x238   : > { %v737_v41 = vadd.f32 %v2204_v37, %v736_v40  ;;  %v762_v4 = vpack.c.bf16 %v740_v44, %v740_v44 }
 0x239   : > { %v2310_v42 = vpop.f32.mrf.mxu0 }
 0x23a   : > { %v2487_v43 = vpack.i.bf16 %v737_v41, %v734_v39  ;;  %v741_v45 = vmul.f32 0.35355338, %v737_v41  ;;  %v2870_v47 = vpack.c.bf16 %v737_v41, %v737_v41 }
 0x23c   : > { %2488 = vrot.lane.b32.xlu1 %v2487_v43, %s2660_s21  ;;  %2483 = vrot.lane.b32.xlu0 %v2487_v43, %s2661_s24  ;;  %v2497_v46 = vpack.i.bf16 %v741_v45, %v740_v44  ;;  %v763_v7 = vpack.c.bf16 %v741_v45, %v741_v45 }
 0x240   : > { %2493 = vrot.lane.b32.xlu1 %v2487_v43, %s2662_s23  ;;  %849 = vrot.lane.b32.xlu0 %v2870_v47, %s2663_s13 }
 0x244   : > { %799 = vrot.lane.b32.xlu1 %v2875_v48, %s2663_s13 }
 0x2ae   : > { %v2489_v49 = vpop.permute.xlu1 %2488  ;;  %v2484_v50 = vpop.permute.xlu0 %2483 }
 0x2af   : > { %v2486_v51 = vunpack.i.h.bf16 %v2484_v50  ;;  %v2485_v52 = vunpack.i.l.bf16 %v2484_v50  ;;  %v2490_v53 = vunpack.i.l.bf16 %v2489_v49  ;;  %v2491_v57 = vunpack.i.h.bf16 %v2489_v49 }
 0x2b1   : > { %v2879_v54 = vpack.c.bf16 %v2486_v51, %v2486_v51  ;;  %v2881_v55 = vpack.c.bf16 %v2485_v52, %v2485_v52  ;;  %v2887_v58 = vpack.c.bf16 %v2490_v53, %v2490_v53  ;;  %v2892_v61 = vpack.c.bf16 %v2491_v57, %v2491_v57 }
 0x2b2   : > { %v2494_v56 = vpop.permute.xlu1 %2493  ;;  %v850_v0 = vpop.permute.xlu0 %849 }
 0x2b3   : > { %898 = vrot.lane.b32.xlu1 %v2881_v55, %s2663_s13  ;;  %947 = vrot.lane.b32.xlu0 %v2879_v54, %s2663_s13  ;;  %v2496_v62 = vunpack.i.h.bf16 %v2494_v56  ;;  %v2495_v63 = vunpack.i.l.bf16 %v2494_v56  ;;  %v855_v6 = vsel %vm801_vm3, %v850_v0, 0 }
 0x2b5   : > { %v2898_v1 = vpack.c.bf16 %v2496_v62, %v2496_v62  ;;  %v2900_v5 = vpack.c.bf16 %v2495_v63, %v2495_v63 }
 0x2b6   : > { %v800_v59 = vpop.permute.xlu1 %799 }
 0x2b7   : > { %v806_v60 = vsel %vm801_vm3, %v800_v59, 0  ;;  %996 = vrot.lane.b32.xlu0 %v2887_v58, %s2663_s13  ;;  %2498 = vrot.lane.b32.xlu1 %v2497_v46, %s2661_s24  ;;  %s2668_s24 = smov [#allocation5]  }
 0x2b8   : > { %2312 = vmatpush3.bf16.xpose.msra.mxu0 %v806_v60 }
 0x2b9   : > { %2317 = vmatprep.subr.bf16.mxu0 %v2658_v17 }
 0x2bb   : > { %2503 = vrot.lane.b32.xlu0 %v2497_v46, %s2660_s21  ;;  %1045 = vrot.lane.b32.xlu1 %v2892_v61, %s2663_s13 }
 0x2bf   : > { %2314 = vmatmul.mubr.msk.bf16.vlgmr.msra.gmra.mxu0 %vm801_vm3, %v762_v4  ;;  %1143 = vrot.lane.b32.xlu0 %v2898_v1, %s2663_s13 }
 0x2c0   : > { %1094 = vrot.lane.b32.xlu1 %v2900_v5, %s2663_s13  ;;  %2318 = vmatpush3.bf16.xpose.msra.mxu0 %v855_v6 }
 0x2c1   : > { %2319 = vmatprep.mubr.msk.bf16.mxu0 %vm2659_vm2, %v2658_v17  ;;  %2329 = vmatprep.subr.bf16.mxu0 %v2658_v17 }
 0x2c4   : > { %2508 = vrot.lane.b32.xlu1 %v2497_v46, %s2662_s23  ;;  %s2025_s23 = sshll.u32 %s2668_s24, 4  ;;  %s2026_s23 = int_to_ptr.vmem [resolvable:$true] %s2025_s23 }
 0x2c5   : > { %s2615_s18 = scalar_lea.vmem %s2026_s23, 256  ;;  %p2622_p6 = scmp.lt.s32.totalorder %s2026_s23, %s2026_s23 }
 0x2c6   : > { %p2616_p3 = scmp.ne.s32.totalorder %s2026_s23, %s2615_s18  ;;  %p2623_p7 = scmp.lt.s32.totalorder %s2615_s18, %s2615_s18 }
 0x2c7   : > { %2320 = vmatmul.mubr.msk.bf16.vlgmr.msra.gmra.mxu0 %vm801_vm3, %v763_v7 }
 0x2c8   : > { %2331 = vmatprep.mubr.msk.bf16.mxu0 %vm2659_vm2, %v2658_v17  ;;  %p2617_p4 = pnand %p2616_p3, %p2457_p2  ;;  %p2624_p8 = por %p2623_p7, %p2622_p6 }
 0x2ca   : > { %p2618_p5 = pneg %p2617_p4 }
 0x2cc   : > { %p2625_p9 = pnand %p2624_p8, %p2618_p5 }
 0x325   : > { %v899_v8 = vpop.permute.xlu1 %898  ;;  %v948_v9 = vpop.permute.xlu0 %947 }
 0x326   : > { %v953_v10 = vsel %vm801_vm3, %v948_v9, 0  ;;  %v904_v11 = vsel %vm801_vm3, %v899_v8, 0 }
 0x327   : > { %2324 = vmatpush3.bf16.xpose.msra.mxu1 %v904_v11  ;;  %2330 = vmatpush3.bf16.xpose.msra.mxu0 %v953_v10 }
 0x328   : > { %2335 = vmatprep.subr.bf16.mxu1 %v2658_v17  ;;  %2341 = vmatprep.subr.bf16.mxu0 %v2658_v17 }
 0x329   : > { %v997_v12 = vpop.permute.xlu0 %996  ;;  %v2499_v13 = vpop.permute.xlu1 %2498 }
 0x32a   : > { %v2501_v14 = vunpack.i.h.bf16 %v2499_v13  ;;  %v2500_v15 = vunpack.i.l.bf16 %v2499_v13  ;;  %v1002_v21 = vsel %vm801_vm3, %v997_v12, 0 }
 0x32c   : > { %v765_v16 = vpack.c.bf16 %v2501_v14, %v2501_v14  ;;  %v764_v18 = vpack.c.bf16 %v2500_v15, %v2500_v15 }
 0x32d   : > { %v2504_v19 = vpop.permute.xlu0 %2503  ;;  %v1046_v20 = vpop.permute.xlu1 %1045 }
 0x32e   : > { %v1051_v22 = vsel %vm801_vm3, %v1046_v20, 0  ;;  %2326 = vmatmul.mubr.msk.bf16.vlgmr.msra.gmra.mxu1 %vm801_vm3, %v764_v18  ;;  %2332 = vmatmul.mubr.msk.bf16.vlgmr.msra.gmra.mxu0 %vm801_vm3, %v765_v16  ;;  %v2506_v23 = vunpack.i.h.bf16 %v2504_v19  ;;  %v2505_v24 = vunpack.i.l.bf16 %v2504_v19 }
 0x32f   : > { %2336 = vmatpush3.bf16.xpose.msra.mxu1 %v1002_v21  ;;  %2342 = vmatpush3.bf16.xpose.msra.mxu0 %v1051_v22 }
 0x330   : > { %2337 = vmatprep.mubr.msk.bf16.mxu1 %vm2659_vm2, %v2658_v17  ;;  %2343 = vmatprep.mubr.msk.bf16.mxu0 %vm2659_vm2, %v2658_v17  ;;  %v767_v27 = vpack.c.bf16 %v2506_v23, %v2506_v23  ;;  %v766_v28 = vpack.c.bf16 %v2505_v24, %v2505_v24 }
 0x331   : > { %2347 = vmatprep.subr.bf16.mxu1 %v2658_v17  ;;  %2353 = vmatprep.subr.bf16.mxu0 %v2658_v17  ;;  %v1144_v26 = vpop.permute.xlu0 %1143 }
 0x332   : > { %v1095_v25 = vpop.permute.xlu1 %1094  ;;  %v1149_v29 = vsel %vm801_vm3, %v1144_v26, 0 }
 0x333   : > { %v1100_v30 = vsel %vm801_vm3, %v1095_v25, 0 }
 0x336   : > { %v2509_v31 = vpop.permute.xlu1 %2508  ;;  %2338 = vmatmul.mubr.msk.bf16.vlgmr.msra.gmra.mxu1 %vm801_vm3, %v766_v28  ;;  %2344 = vmatmul.mubr.msk.bf16.vlgmr.msra.gmra.mxu0 %vm801_vm3, %v767_v27 }
 0x337   : > { %2348 = vmatpush3.bf16.xpose.msra.mxu1 %v1100_v30  ;;  %2354 = vmatpush3.bf16.xpose.msra.mxu0 %v1149_v29  ;;  %v2511_v32 = vunpack.i.h.bf16 %v2509_v31  ;;  %v2510_v33 = vunpack.i.l.bf16 %v2509_v31 }
 0x338   : > { %2349 = vmatprep.mubr.msk.bf16.mxu1 %vm2659_vm2, %v2658_v17  ;;  %2355 = vmatprep.mubr.msk.bf16.mxu0 %vm2659_vm2, %v2658_v17 }
 0x339   : > { %2365 = vmatprep.subr.bf16.mxu0 %v2658_v17  ;;  %2359 = vmatprep.subr.bf16.mxu1 %v2658_v17  ;;  %v769_v34 = vpack.c.bf16 %v2511_v32, %v2511_v32  ;;  %v768_v35 = vpack.c.bf16 %v2510_v33, %v2510_v33 }
 0x33e   : > { %2350 = vmatmul.mubr.msk.bf16.vlgmr.msra.gmra.mxu1 %vm801_vm3, %v768_v35  ;;  %2356 = vmatmul.mubr.msk.bf16.vlgmr.msra.gmra.mxu0 %vm801_vm3, %v769_v34 }
 0x33f   : > { %2361 = vmatprep.mubr.msk.bf16.mxu1 %vm2659_vm2, %v2658_v17  ;;  %2367 = vmatprep.mubr.msk.bf16.mxu0 %vm2659_vm2, %v2658_v17 }
 0x37f   : > { %v842_v36 = vpop.f32.mrf.mxu0 }
 0x380   : > { %v1191_v37 = vsel %vm801_vm3, %v842_v36, -inf }
 0x381   : > { %1192 = vmax.xlane.f32.xlu0 %v1191_v37  ;;  %v2315_v38 = vpop.f32.mrf.mxu0 }
 0x383   : > { %v845_v39 = vpop.f32.mrf.mxu0 }
 0x385   : > { %v2316_v40 = vpop.f32.mrf.mxu0 }
 0x387   : > { %v891_v41 = vpop.f32.mrf.mxu0 }
 0x388   : > { %v1194_v42 = vsel %vm801_vm3, %v891_v41, -inf }
 0x389   : > { %1195 = vmax.xlane.f32.xlu1 %v1194_v42  ;;  %v2321_v43 = vpop.f32.mrf.mxu0 }
 0x38b   : > { %v894_v44 = vpop.f32.mrf.mxu0 }
 0x38d   : > { %v2322_v45 = vpop.f32.mrf.mxu0 }
 0x3ee   : > { %v940_v46 = vpop.f32.mrf.mxu1  ;;  %v2947_v49 = vpop.f32.mrf.mxu0 }
 0x3ef   : > { %v1197_v50 = vsel %vm801_vm3, %v940_v46, -inf  ;;  %v1200_v57 = vsel %vm801_vm3, %v2947_v49, -inf }
 0x3f0   : > { %v2327_v51 = vpop.f32.mrf.mxu1  ;;  %1198 = vmax.xlane.f32.xlu0 %v1197_v50  ;;  %v2333_v52 = vpop.f32.mrf.mxu0 }
 0x3f2   : > { %v943_v53 = vpop.f32.mrf.mxu1  ;;  %v992_v56 = vpop.f32.mrf.mxu0 }
 0x3f4   : > { %v2328_v59 = vpop.f32.mrf.mxu1  ;;  %1201 = vmax.xlane.f32.xlu0 %v1200_v57  ;;  %v2334_v60 = vpop.f32.mrf.mxu0 }
 0x3f6   : > { %v2952_v62 = vpop.f32.mrf.mxu1  ;;  %v1087_v63 = vpop.f32.mrf.mxu0 }
 0x3f7   : > { %v1203_v0 = vsel %vm801_vm3, %v2952_v62, -inf  ;;  %v1206_v4 = vsel %vm801_vm3, %v1087_v63, -inf }
 0x3f8   : > { %v2339_v6 = vpop.f32.mrf.mxu1  ;;  %1204 = vmax.xlane.f32.xlu0 %v1203_v0  ;;  %1207 = vmax.xlane.f32.xlu1 %v1206_v4  ;;  %v2345_v7 = vpop.f32.mrf.mxu0 }
 0x3fa   : > { %v1041_v8 = vpop.f32.mrf.mxu1  ;;  %v1090_v9 = vpop.f32.mrf.mxu0 }
 0x3fc   : > { %v2340_v10 = vpop.f32.mrf.mxu1  ;;  %v2346_v11 = vpop.f32.mrf.mxu0 }
 0x3fe   : > { %v2957_v12 = vpop.f32.mrf.mxu1  ;;  %v2959_v13 = vpop.f32.mrf.mxu0 }
 0x3ff   : > { %v1209_v14 = vsel %vm801_vm3, %v2957_v12, -inf  ;;  %v1212_v25 = vsel %vm801_vm3, %v2959_v13, -inf }
 0x400   : > { %v2351_v15 = vpop.f32.mrf.mxu1  ;;  %1210 = vmax.xlane.f32.xlu0 %v1209_v14  ;;  %v2357_v16 = vpop.f32.mrf.mxu0 }
 0x402   : > { %v1139_v18 = vpop.f32.mrf.mxu1  ;;  %v1188_v19 = vpop.f32.mrf.mxu0 }
 0x404   : > { %v2352_v20 = vpop.f32.mrf.mxu1  ;;  %v2358_v21 = vpop.f32.mrf.mxu0 }
 0x409   : > { %1336 = vrot.lane.b32.xlu1 %v2870_v47, %s2664_s27 }
 0x40a   : > { %v1193_v22 = vpop.xlane.xlu0 %1192 }
 0x40b   : > { %v1215_v23 = vsub.f32 %v842_v36, %v1193_v22 }
 0x40d   : > { %1384 = vrot.lane.b32.xlu1 %v2881_v55, %s2664_s27  ;;  %v1223_v24 = vmul.f32 1.442695, %v1215_v23 }
 0x40f   : > { %2545 = vpow2.f32 %v1223_v24 }
 0x412   : > { %v1196_v47 = vpop.xlane.xlu1 %1195 }
 0x413   : > { %v1216_v55 = vsub.f32 %v891_v41, %v1196_v47 }
 0x416   : > { %1287 = vrot.lane.b32.xlu0 %v2875_v48, %s2664_s27  ;;  %v1225_v48 = vmul.f32 1.442695, %v1216_v55 }
 0x418   : > { %2547 = vpow2.f32 %v1225_v48 }
 0x41c   : > { %v2971_v26 = vpop.eup %2545 }
 0x41d   : > { %v1239_v27 = vsel %vm801_vm3, %v2971_v26, 0.0 }
 0x425   : > { %v2977_v28 = vpop.eup %2547 }
 0x426   : > { %v1242_v29 = vsel %vm801_vm3, %v2977_v28, 0.0 }
 0x431   : > { %1213 = vmax.xlane.f32.xlu1 %v1212_v25 }
 0x435   : > { %1240 = vadd.xlane.f32.xlu0 %v1239_v27 }
 0x442   : > { %1432 = vrot.lane.b32.xlu1 %v2879_v54, %s2664_s27 }
 0x466   : > { %1243 = vadd.xlane.f32.xlu1 %v1242_v29 }
 0x477   : > { %1528 = vrot.lane.b32.xlu1 %v2892_v61, %s2664_s27 }
 0x479   : > { %v1199_v30 = vpop.xlane.xlu0 %1198 }
 0x47a   : > { %v1217_v31 = vsub.f32 %v940_v46, %v1199_v30 }
 0x47c   : > { %v1227_v32 = vmul.f32 1.442695, %v1217_v31 }
 0x47d   : > { %v1202_v33 = vpop.xlane.xlu0 %1201 }
 0x47e   : > { %2549 = vpow2.f32 %v1227_v32  ;;  %v1218_v54 = vsub.f32 %v2947_v49, %v1202_v33 }
 0x480   : > { %v1229_v37 = vmul.f32 1.442695, %v1218_v54 }
 0x481   : > { %v1208_v34 = vpop.xlane.xlu1 %1207  ;;  %v1205_v35 = vpop.xlane.xlu0 %1204 }
 0x482   : > { %v1220_v38 = vsub.f32 %v1087_v63, %v1208_v34  ;;  %2551 = vpow2.f32 %v1229_v37  ;;  %v1219_v51 = vsub.f32 %v2952_v62, %v1205_v35 }
 0x484   : > { %v1233_v61 = vmul.f32 1.442695, %v1220_v38  ;;  %v1231_v52 = vmul.f32 1.442695, %v1219_v51 }
 0x485   : > { %v1337_v36 = vpop.permute.xlu1 %1336 }
 0x486   : > { %v1342_v39 = vsel %vm1292_vm4, %v1337_v36, 0  ;;  %2553 = vpow2.f32 %v1233_v61 }
 0x487   : > { %2366 = vmatpush3.bf16.msra.mxu0 %v1342_v39  ;;  %2555 = vpow2.f32 %v1231_v52 }
 0x488   : > { %2377 = vmatprep.subr.bf16.mxu0 %v2658_v17 }
 0x489   : > { %v1211_v40 = vpop.xlane.xlu0 %1210  ;;  %v1385_v57 = vpop.permute.xlu1 %1384 }
 0x48a   : > { %v1221_v53 = vsub.f32 %v2957_v12, %v1211_v40  ;;  %v1390_v12 = vsel %vm1292_vm4, %v1385_v57, 0 }
 0x48b   : > { %v2986_v41 = vpop.eup %2549 }
 0x48c   : > { %v1245_v42 = vsel %vm801_vm3, %v2986_v41, 0.0  ;;  %v1235_v56 = vmul.f32 1.442695, %v1221_v53 }
 0x48d   : > { %1246 = vadd.xlane.f32.xlu0 %v1245_v42  ;;  %v1288_v43 = vpop.permute.xlu0 %1287 }
 0x48e   : > { %v1294_v44 = vsel %vm1292_vm4, %v1288_v43, 0  ;;  %2557 = vpow2.f32 %v1235_v56 }
 0x48f   : > { %2360 = vmatpush3.bf16.msra.mxu1 %v1294_v44  ;;  %v2992_v45 = vpop.eup %2551 }
 0x490   : > { %2371 = vmatprep.subr.bf16.mxu1 %v2658_v17  ;;  %v1248_v46 = vsel %vm801_vm3, %v2992_v45, 0.0 }
 0x493   : > { %v2996_v49 = vpop.eup %2553 }
 0x494   : > { %v1254_v50 = vsel %vm801_vm3, %v2996_v49, 0.0  ;;  %v3005_v0 = vpop.eup %2555 }
 0x49b   : > { %1249 = vadd.xlane.f32.xlu1 %v1248_v46  ;;  %v3009_v62 = vpop.eup %2557 }
 0x49c   : > { %v1257_v6 = vsel %vm801_vm3, %v3009_v62, 0.0 }
 0x49f   : > { %1255 = vadd.xlane.f32.xlu1 %v1254_v50 }
 0x4a3   : > { %1480 = vrot.lane.b32.xlu0 %v2887_v58, %s2664_s27  ;;  %v1251_v58 = vsel %vm801_vm3, %v3005_v0, 0.0 }
 0x4ba   : > { %v1214_v59 = vpop.xlane.xlu1 %1213 }
 0x4bb   : > { %v1222_v60 = vsub.f32 %v2959_v13, %v1214_v59 }
 0x4bd   : > { %v1237_v63 = vmul.f32 1.442695, %v1222_v60 }
 0x4be   : > { %v1241_v4 = vpop.xlane.xlu0 %1240  ;;  %v1433_v13 = vpop.permute.xlu1 %1432 }
 0x4bf   : > { %2559 = vpow2.f32 %v1237_v63  ;;  %v1438_v19 = vsel %vm1292_vm4, %v1433_v13, 0 }
 0x4c0   : > { %2561 = vrcp.f32 %v1241_v4 }
 0x4c2   : > { %1252 = vadd.xlane.f32.xlu0 %v1251_v58 }
 0x4c6   : > { %1258 = vadd.xlane.f32.xlu0 %v1257_v6 }
 0x4cc   : > { %v3013_v7 = vpop.eup %2559 }
 0x4cd   : > { %v2562_v8 = vpop.eup %2561  ;;  %v1260_v9 = vsel %vm801_vm3, %v3013_v7, 0.0 }
 0x4ce   : > { %1261 = vadd.xlane.f32.xlu1 %v1260_v9  ;;  %v1271_v10 = vmul.f32 %v2562_v8, %v2971_v26 }
 0x4d0   : > { %v1279_v11 = vpack.c.bf16 %v1271_v10, %v1271_v10 }
 0x4d2   : > { %2362 = vmatmul.mubr.msk.bf16.vlgmr.msra.gmra.mxu1 %vm801_vm3, %v1279_v11  ;;  %v2529_v11 = vld [vmem:[%s2794_s20 + $0x8] sm:$0xff]  }
 0x4d3   : > { %2372 = vmatpush3.bf16.msra.mxu1 %v1390_v12  ;;  %2373 = vmatprep.mubr.msk.bf16.mxu1 %vm2659_vm2, %v2658_v17 }
 0x4d4   : > { %2383 = vmatprep.subr.bf16.mxu1 %v2658_v17 }
 0x4dc   : > { %1576 = vrot.lane.b32.xlu0 %v2900_v5, %s2664_s27 }
 0x4df   : > { %1624 = vrot.lane.b32.xlu1 %v2898_v1, %s2664_s27 }
 0x4ef   : > { %v1244_v14 = vpop.xlane.xlu1 %1243 }
 0x4f0   : > { %2563 = vrcp.f32 %v1244_v14 }
 0x4f3   : > { %v1529_v1 = vpop.permute.xlu1 %1528 }
 0x4fd   : > { %v2564_v15 = vpop.eup %2563 }
 0x4fe   : > { %v1272_v16 = vmul.f32 %v2564_v15, %v2977_v28  ;;  %v1534_v28 = vsel %vm1292_vm4, %v1529_v1, 0 }
 0x500   : > { %v1280_v18 = vpack.c.bf16 %v1272_v16, %v1272_v16  ;;  %v2530_v16 = vld [vmem:[%s2794_s20] sm:$0xff]  }
 0x502   : > { %2368 = vmatmul.mubr.msk.bf16.vlgmr.msra.gmra.mxu0 %vm801_vm3, %v1280_v18 }
 0x503   : > { %2378 = vmatpush3.bf16.msra.mxu0 %v1438_v19  ;;  %2379 = vmatprep.mubr.msk.bf16.mxu0 %vm2659_vm2, %v2658_v17 }
 0x504   : > { %2389 = vmatprep.subr.bf16.mxu0 %v2658_v17 }
 0x516   : > { %v1247_v5 = vpop.xlane.xlu0 %1246 }
 0x517   : > { %2565 = vrcp.f32 %v1247_v5 }
 0x51a   : > { %v1481_v23 = vpop.permute.xlu0 %1480 }
 0x51b   : > { %v1486_v26 = vsel %vm1292_vm4, %v1481_v23, 0 }
 0x524   : > { %v2566_v20 = vpop.eup %2565  ;;  %v1250_v21 = vpop.xlane.xlu1 %1249 }
 0x525   : > { %2567 = vrcp.f32 %v1250_v21  ;;  %v1273_v22 = vmul.f32 %v2566_v20, %v2986_v41 }
 0x527   : > { %v1281_v24 = vpack.c.bf16 %v1273_v22, %v1273_v22 }
 0x528   : > { %v1256_v25 = vpop.xlane.xlu1 %1255 }
 0x529   : > { %2569 = vrcp.f32 %v1256_v25  ;;  %2374 = vmatmul.mubr.msk.bf16.vlgmr.msra.gmra.mxu1 %vm801_vm3, %v1281_v24 }
 0x52a   : > { %2384 = vmatpush3.bf16.msra.mxu1 %v1486_v26  ;;  %2385 = vmatprep.mubr.msk.bf16.mxu1 %vm2659_vm2, %v2658_v17 }
 0x52b   : > { %2395 = vmatprep.subr.bf16.mxu1 %v2658_v17 }
 0x532   : > { %v2568_v27 = vpop.eup %2567 }
 0x533   : > { %v1274_v47 = vmul.f32 %v2568_v27, %v2992_v45 }
 0x535   : > { %v1282_v55 = vpack.c.bf16 %v1274_v47, %v1274_v47 }
 0x536   : > { %v2570_v48 = vpop.eup %2569 }
 0x537   : > { %2380 = vmatmul.mubr.msk.bf16.vlgmr.msra.gmra.mxu0 %vm801_vm3, %v1282_v55  ;;  %v1276_v29 = vmul.f32 %v2570_v48, %v2996_v49 }
 0x538   : > { %2390 = vmatpush3.bf16.msra.mxu0 %v1534_v28  ;;  %2391 = vmatprep.mubr.msk.bf16.mxu0 %vm2659_vm2, %v2658_v17 }
 0x539   : > { %2401 = vmatprep.subr.bf16.mxu0 %v2658_v17  ;;  %v1284_v30 = vpack.c.bf16 %v1276_v29, %v1276_v29 }
 0x53f   : > { %2392 = vmatmul.mubr.msk.bf16.vlgmr.msra.gmra.mxu0 %vm801_vm3, %v1284_v30 }
 0x540   : > { %2403 = vmatprep.mubr.msk.bf16.mxu0 %vm2659_vm2, %v2658_v17 }
 0x54b   : > { %v1253_v31 = vpop.xlane.xlu0 %1252 }
 0x54c   : > { %2571 = vrcp.f32 %v1253_v31 }
 0x54f   : > { %v1259_v32 = vpop.xlane.xlu0 %1258 }
 0x550   : > { %2573 = vrcp.f32 %v1259_v32 }
 0x553   : > { %v1577_v35 = vpop.permute.xlu0 %1576 }
 0x554   : > { %v1582_v40 = vsel %vm1292_vm4, %v1577_v35, 0 }
 0x557   : > { %v1262_v33 = vpop.xlane.xlu1 %1261 }
 0x558   : > { %2575 = vrcp.f32 %v1262_v33 }
 0x559   : > { %v2572_v34 = vpop.eup %2571 }
 0x55a   : > { %v1275_v54 = vmul.f32 %v2572_v34, %v3005_v0 }
 0x55b   : > { %v1625_v36 = vpop.permute.xlu1 %1624 }
 0x55c   : > { %v1630_v37 = vsel %vm1292_vm4, %v1625_v36, 0  ;;  %v1283_v38 = vpack.c.bf16 %v1275_v54, %v1275_v54 }
 0x55d   : > { %v2574_v39 = vpop.eup %2573  ;;  %2402 = vmatpush3.bf16.msra.mxu0 %v1630_v37 }
 0x55e   : > { %2386 = vmatmul.mubr.msk.bf16.vlgmr.msra.gmra.mxu1 %vm801_vm3, %v1283_v38  ;;  %2415 = vmatprep.subr.bf16.mxu0 %v2658_v17  ;;  %v1277_v61 = vmul.f32 %v2574_v39, %v3009_v62  ;;  %v2224_v38 = vld [vmem:[%s3181_s17] ss:$0 sm:$0xff] }
 0x55f   : > { %2396 = vmatpush3.bf16.msra.mxu1 %v1582_v40  ;;  %2397 = vmatprep.mubr.msk.bf16.mxu1 %vm2659_vm2, %v2658_v17 }
 0x560   : > { %2407 = vmatprep.subr.bf16.mxu1 %v2658_v17  ;;  %v1285_v41 = vpack.c.bf16 %v1277_v61, %v1277_v61 }
 0x565   : > { %v2576_v42 = vpop.eup %2575 }
 0x566   : > { %2398 = vmatmul.mubr.msk.bf16.vlgmr.msra.gmra.mxu1 %vm801_vm3, %v1285_v41  ;;  %v1278_v43 = vmul.f32 %v2576_v42, %v3013_v7 }
 0x567   : > { %2411 = vmatprep.mubr.msk.bf16.mxu1 %vm2659_vm2, %v2658_v17  ;;  %2408 = vmatpush3.bf16.msra.mxu1 %v2529_v11  ;;  %v2228_v11 = vld [vmem:[%s594_s25] ss:$0 sm:$0xff] }
 0x568   : > { %v1286_v44 = vpack.c.bf16 %v1278_v43, %v1278_v43  ;;  %2409 = vmatprep.subr.bf16.mxu1 %v2658_v17 }
 0x56a   : > { %2404 = vmatmul.mubr.msk.bf16.vlgmr.msra.gmra.mxu0 %vm801_vm3, %v1286_v44 }
 0x56b   : > { %2419 = vmatprep.mubr.msk.bf16.mxu0 %vm2659_vm2, %v2658_v17  ;;  %2410 = vmatpush3.bf16.msra.mxu1 %v2530_v16 }
 0x56c   : > { %2423 = vmatprep.subr.bf16.mxu1 %v2658_v17 }
 0x592   : > { %v1330_v45 = vpop.f32.mrf.mxu1 }
 0x594   : > { %v2363_v46 = vpop.f32.mrf.mxu1 }
 0x596   : > { %v1333_v49 = vpop.f32.mrf.mxu1 }
 0x598   : > { %v2364_v50 = vpop.f32.mrf.mxu1 }
 0x5c2   : > { %v1378_v51 = vpop.f32.mrf.mxu0 }
 0x5c4   : > { %v2369_v52 = vpop.f32.mrf.mxu0 }
 0x5c6   : > { %v1381_v53 = vpop.f32.mrf.mxu0 }
 0x5c8   : > { %v2370_v56 = vpop.f32.mrf.mxu0 }
 0x5e9   : > { %v1426_v57 = vpop.f32.mrf.mxu1 }
 0x5eb   : > { %v2375_v59 = vpop.f32.mrf.mxu1 }
 0x5ed   : > { %v1429_v60 = vpop.f32.mrf.mxu1 }
 0x5ef   : > { %v2376_v63 = vpop.f32.mrf.mxu1 }
 0x5f0   : > { %v2531_v63 = vld [vmem:[%s2811_s3 + $0x8] sm:$0xff]  }
 0x5f1   : > { %2416 = vmatpush3.bf16.msra.mxu0 %v2531_v63 }
 0x5f2   : > { %2417 = vmatprep.subr.bf16.mxu0 %v2658_v17 }
 0x5f7   : > { %v1474_v0 = vpop.f32.mrf.mxu0 }
 0x5f8   : > { %v2512_v4 = vpack.i.bf16 %v1474_v0, %v1426_v57  ;;  %v2532_v0 = vld [vmem:[%s2811_s3] sm:$0xff]  }
 0x5f9   : > { %v2381_v58 = vpop.f32.mrf.mxu0  ;;  %2418 = vmatpush3.bf16.msra.mxu0 %v2532_v0 }
 0x5fa   : > { %2513 = vrot.lane.b32.xlu0 %v2512_v4, %s2665_s16 }
 0x5fb   : > { %v1477_v62 = vpop.f32.mrf.mxu0 }
 0x5fd   : > { %v2382_v6 = vpop.f32.mrf.mxu0 }
 0x5ff   : > { %v1570_v7 = vpop.f32.mrf.mxu0 }
 0x601   : > { %v2393_v8 = vpop.f32.mrf.mxu0 }
 0x603   : > { %v1573_v9 = vpop.f32.mrf.mxu0 }
 0x605   : > { %v2394_v10 = vpop.f32.mrf.mxu0 }
 0x61e   : > { %v1522_v12 = vpop.f32.mrf.mxu1 }
 0x61f   : > { %v2517_v13 = vpack.i.bf16 %v1570_v7, %v1522_v12 }
 0x620   : > { %v2387_v14 = vpop.f32.mrf.mxu1 }
 0x621   : > { %2518 = vrot.lane.b32.xlu1 %v2517_v13, %s2666_s29 }
 0x622   : > { %v1525_v15 = vpop.f32.mrf.mxu1 }
 0x623   : > { %v2229_v15 = vld [vmem:[%s597_s30] ss:$0 sm:$0xff] }
 0x624   : > { %v2388_v18 = vpop.f32.mrf.mxu1 }
 0x626   : > { %v1618_v19 = vpop.f32.mrf.mxu1 }
 0x628   : > { %v2399_v5 = vpop.f32.mrf.mxu1 }
 0x62a   : > { %v1621_v1 = vpop.f32.mrf.mxu1  ;;  %v1666_v20 = vpop.f32.mrf.mxu0 }
 0x62b   : > { %v2522_v21 = vpack.i.bf16 %v1666_v20, %v1618_v19  ;;  %v2533_v1 = vld [vmem:[%s2821_s22 + $0x38] sm:$0xff]   ;;  %v2534_v20 = vld [vmem:[%s2821_s22 + $0x30] sm:$0xff]  }
 0x62c   : > { %v2400_v22 = vpop.f32.mrf.mxu1  ;;  %v2405_v23 = vpop.f32.mrf.mxu0 }
 0x62d   : > { %2523 = vrot.lane.b32.xlu0 %v2522_v21, %s2667_s14  ;;  %v2535_v21 = vld [vmem:[%s2821_s22 + $0x28] sm:$0xff]   ;;  %v2536_v22 = vld [vmem:[%s2821_s22 + $0x20] sm:$0xff]   ;;  %v2537_v23 = vld [vmem:[%s2821_s22 + $0x18] sm:$0xff]  }
 0x62e   : > { %v1669_v24 = vpop.f32.mrf.mxu0 }
 0x62f   : > { %v2538_v24 = vld [vmem:[%s2821_s22 + $0x10] sm:$0xff]  }
 0x630   : > { %v2406_v25 = vpop.f32.mrf.mxu0 }
 0x631   : > { %v2539_v25 = vld [vmem:[%s2821_s22 + $0x8] sm:$0xff]  }
 0x66c   : > { %v2514_v26 = vpop.permute.xlu0 %2513 }
 0x66d   : > { %v2516_v47 = vunpack.i.h.bf16 %v2514_v26  ;;  %v2515_v55 = vunpack.i.l.bf16 %v2514_v26  ;;  %v2540_v26 = vld [vmem:[%s2821_s22] sm:$0xff]  }
 0x66f   : > { %v1697_v30 = vsel %vm801_vm3, %v1378_v51, %v2516_v47  ;;  %v1696_v31 = vsel %vm801_vm3, %v1330_v45, %v2515_v55 }
 0x693   : > { %v2519_v27 = vpop.permute.xlu1 %2518 }
 0x694   : > { %v2521_v48 = vunpack.i.h.bf16 %v2519_v27  ;;  %v2520_v28 = vunpack.i.l.bf16 %v2519_v27  ;;  %v2230_v27 = vld [vmem:[%s605_s5] ss:$0 sm:$0xff] }
 0x696   : > { %v1700_v34 = vsel %vm1698_vm5, %v1697_v30, %v2521_v48  ;;  %v1699_v54 = vsel %vm1698_vm5, %v1696_v31, %v2520_v28 }
 0x69f   : > { %v2524_v29 = vpop.permute.xlu0 %2523 }
 0x6a0   : > { %v2526_v32 = vunpack.i.h.bf16 %v2524_v29  ;;  %v2525_v33 = vunpack.i.l.bf16 %v2524_v29 }
 0x6a2   : > { %v1703_v35 = vsel %vm1701_vm6, %v1700_v34, %v2526_v32  ;;  %v1702_v36 = vsel %vm1701_vm6, %v1699_v54, %v2525_v33 }
 0x6a3   : > { %v1704_v37 = vpack.c.bf16 %v1703_v35, %v1702_v36 }
 0x6a5   : > { %2412 = vmatmul.mubr.msk.bf16.vlgmr.msra.gmra.mxu1 %vm628_vm1, %v1704_v37 }
 0x6a6   : > { %2439 = vmatprep.mubr.msk.bf16.mxu1 %vm2659_vm2, %v2658_v17  ;;  %2424 = vmatpush3.bf16.msra.mxu1 %v2533_v1 }
 0x6a7   : > { %2425 = vmatprep.subr.bf16.mxu1 %v2658_v17 }
 0x6aa   : > { %2426 = vmatpush3.bf16.msra.mxu1 %v2534_v20 }
 0x6ab   : > { %2427 = vmatprep.subr.bf16.mxu1 %v2658_v17 }
 0x6ae   : > { %2428 = vmatpush3.bf16.msra.mxu1 %v2535_v21 }
 0x6af   : > { %2429 = vmatprep.subr.bf16.mxu1 %v2658_v17 }
 0x6b2   : > { %2430 = vmatpush3.bf16.msra.mxu1 %v2536_v22 }
 0x6b3   : > { %2431 = vmatprep.subr.bf16.mxu1 %v2658_v17 }
 0x6b6   : > { %2432 = vmatpush3.bf16.msra.mxu1 %v2537_v23 }
 0x6b7   : > { %2433 = vmatprep.subr.bf16.mxu1 %v2658_v17 }
 0x6ba   : > { %2434 = vmatpush3.bf16.msra.mxu1 %v2538_v24 }
 0x6bb   : > { %2435 = vmatprep.subr.bf16.mxu1 %v2658_v17 }
 0x6be   : > { %2436 = vmatpush3.bf16.msra.mxu1 %v2539_v25 }
 0x6bf   : > { %2437 = vmatprep.subr.bf16.mxu1 %v2658_v17 }
 0x6c2   : > { %2438 = vmatpush3.bf16.msra.mxu1 %v2540_v26 }
 0x765   : > { %v1765_v39 = vpop.f32.mrf.mxu1 }
 0x766   : > { %v1766_v40 = vadd.f32 %v2224_v38, %v1765_v39 }
 0x767   : > { %v2413_v61 = vpop.f32.mrf.mxu1 }
 0x768   : > { %v3081_v41 = vadd.f32 %v1766_v40, %v2829_v2 }
 0x769   : > { %v1768_v42 = vpop.f32.mrf.mxu1 }
 0x76a   : > { %v1769_v43 = vadd.f32 %v2224_v38, %v1768_v42  ;;  %v1776_v44 = vsel %vm628_vm1, %v3081_v41, 0.0  ;;  %v2236_v42 = vld [vmem:[%s613_s28] ss:$0 sm:$0xff] }
 0x76b   : > { %1777 = vadd.xlane.f32.xlu1 %v1776_v44  ;;  %v2414_v45 = vpop.f32.mrf.mxu1 }
 0x76c   : > { %v3086_v46 = vadd.f32 %v1769_v43, %v2831_v3 }
 0x76e   : > { %v1779_v49 = vsel %vm628_vm1, %v3086_v46, 0.0 }
 0x76f   : > { %1780 = vadd.xlane.f32.xlu0 %v1779_v49 }
 0x7f4   : > { %v1778_v50 = vpop.xlane.xlu1 %1777 }
 0x7f5   : > { %v1782_v51 = vmul.f32 0.03125, %v1778_v50 }
 0x7f7   : > { %v1784_v2 = vsub.f32 %v3081_v41, %v1782_v51 }
 0x7f8   : > { %v1781_v52 = vpop.xlane.xlu0 %1780 }
 0x7f9   : > { %v1783_v53 = vmul.f32 0.03125, %v1781_v52  ;;  %v1786_v56 = vmul.f32 %v1784_v2, %v1784_v2 }
 0x7fb   : > { %v1785_v57 = vsub.f32 %v3086_v46, %v1783_v53  ;;  %v1788_v59 = vsel %vm628_vm1, %v1786_v56, 0.0 }
 0x7fc   : > { %1789 = vadd.xlane.f32.xlu0 %v1788_v59 }
 0x7fd   : > { %v1787_v60 = vmul.f32 %v1785_v57, %v1785_v57 }
 0x7ff   : > { %v1791_v3 = vsel %vm628_vm1, %v1787_v60, 0.0 }
 0x800   : > { %1792 = vadd.xlane.f32.xlu0 %v1791_v3 }
 0x885   : > { %v1790_v4 = vpop.xlane.xlu0 %1789 }
 0x886   : > { %v1794_v58 = vmul.f32 0.03125, %v1790_v4 }
 0x888   : > { %v1796_v62 = vadd.f32 1e-05, %v1794_v58 }
 0x889   : > { %v1793_v6 = vpop.xlane.xlu0 %1792 }
 0x88a   : > { %2577 = vrsqrt.f32 %v1796_v62  ;;  %v1795_v7 = vmul.f32 0.03125, %v1793_v6 }
 0x88c   : > { %v1797_v8 = vadd.f32 1e-05, %v1795_v7 }
 0x88e   : > { %2579 = vrsqrt.f32 %v1797_v8 }
 0x897   : > { %v2578_v9 = vpop.eup %2577 }
 0x898   : > { %v1800_v10 = vmul.f32 %v2578_v9, %v1784_v2 }
 0x89a   : > { %v1808_v14 = vmul.f32 %v2228_v11, %v1800_v10 }
 0x89b   : > { %v2580_v12 = vpop.eup %2579 }
 0x89c   : > { %v1801_v13 = vmul.f32 %v2580_v12, %v1785_v57  ;;  %v1816_v18 = vadd.f32 %v2229_v15, %v1808_v14 }
 0x89e   : > { %v1809_v16 = vmul.f32 %v2228_v11, %v1801_v13 }
 0x8a0   : > { %v1817_v19 = vadd.f32 %v2229_v15, %v1809_v16 }
 0x8a2   : > { %v1818_v5 = vpack.c.bf16 %v1817_v19, %v1816_v18 }
 0x8a4   : > { %2420 = vmatmul.mubr.msk.bf16.vlgmr.msra.gmra.mxu0 %vm628_vm1, %v1818_v5 }
 0x964   : > { %v1879_v47 = vpop.f32.mrf.mxu0 }
 0x965   : > { %v1880_v55 = vadd.f32 %v2230_v27, %v1879_v47 }
 0x966   : > { %v2421_v48 = vpop.f32.mrf.mxu0 }
 0x967   : > { %v2234_v28 = vmul.f32 -1.702, %v1880_v55 }
 0x968   : > { %v1882_v29 = vpop.f32.mrf.mxu0 }
 0x969   : > { %v1890_v30 = vmul.f32 1.442695, %v2234_v28  ;;  %v1883_v31 = vadd.f32 %v2230_v27, %v1882_v29 }
 0x96a   : > { %v2422_v32 = vpop.f32.mrf.mxu0 }
 0x96b   : > { %2581 = vpow2.f32 %v1890_v30  ;;  %v2235_v33 = vmul.f32 -1.702, %v1883_v31 }
 0x96d   : > { %v1892_v34 = vmul.f32 1.442695, %v2235_v33 }
 0x96f   : > { %2583 = vpow2.f32 %v1892_v34 }
 0x978   : > { %v2582_v17 = vpop.eup %2581 }
 0x979   : > { %v1894_v54 = vadd.f32 1.0, %v2582_v17 }
 0x97b   : > { %2585 = vrcp.f32 %v1894_v54 }
 0x97c   : > { %v2584_v35 = vpop.eup %2583 }
 0x97d   : > { %v1895_v36 = vadd.f32 1.0, %v2584_v35 }
 0x97f   : > { %2587 = vrcp.f32 %v1895_v36 }
 0x988   : > { %v2586_v37 = vpop.eup %2585 }
 0x989   : > { %v1900_v39 = vmul.f32 %v2586_v37, %v1880_v55 }
 0x98c   : > { %v2588_v38 = vpop.eup %2587 }
 0x98d   : > { %v1901_v40 = vmul.f32 %v2588_v38, %v1883_v31 }
 0x98f   : > { %v1902_v61 = vpack.c.bf16 %v1901_v40, %v1900_v39 }
 0x991   : > { %2440 = vmatmul.mubr.bf16.vlgmr.msra.gmra.mxu1 %v1902_v61 }
 0xa51   : > { %v2008_v43 = vpop.f32.mrf.mxu1 }
 0xa52   : > { %v2009_v44 = vadd.f32 %v2236_v42, %v2008_v43 }
 0xa53   : > { %v2441_v45 = vpop.f32.mrf.mxu1 }
 0xa54   : > { %v2015_v49 = vadd.f32 %v2009_v44, %v3081_v41 }
 0xa55   : > { %v2011_v50 = vpop.f32.mrf.mxu1 }
 0xa56   : > { %2017 = vst.msk [vmem:[#allocation5] sm:$0xff] %vm628_vm1, %v2015_v49  ;;  %v2012_v51 = vadd.f32 %v2236_v42, %v2011_v50 }
 0xa57   : > { %v2442_v2 = vpop.f32.mrf.mxu1 }
 0xa58   : > { %v2016_v52 = vadd.f32 %v2012_v51, %v3086_v46 }
 0xa5a   : > { %2018 = vst.msk [vmem:[#allocation5 + $0x8] sm:$0xff] %vm628_vm1, %v2016_v52 }
 0xa5b   : > { %2628 = shalt.err (!%p2625_p9)
}
 0xa5c   : > { %s2669_s28 = smov 128   ;;  %s3182_s29 = sld [smem:[#allocation12_spill]] }
 0xa62   : > { %2448 = dma.vmem_to_hbm [thread:$0]  (%p2457_p2), %s2026_s23, 256, %s3182_s29, [#allocation4], %s2669_s28, %s2669_s28, %s2665_s16  }
 0xa63   : > { %2648 = dma.done.wait (%p2457_p2), [#allocation4], 256  }
 0xa64   : > { %2650 = vsyncadd (%p2457_p2), [#allocation4], 4294967040 }
 0xa65 PF: > { %s3183_s14 = sld [smem:[#allocation8_spill]] }
 0xa6b   : > { %s25_s25 = sadd.s32 1, %s3183_s14  }
 0xa6c   : > { %p22_p10 = scmp.ge.s32.totalorder %s25_s25, 4  }
 0xa6e   :  { %24 = sbr.rel (!%p22_p10) target bundleno = 7 (0x7), region = 141 }
 0xa73   :  { %2041 = vsyncpa [#allocation3], 1 }
 0xa74   :  { %2043 = vsyncpa [#allocation3 + $0x1], 1 }
 0xa75   :  { %2044 = vsyncpa [#allocation4], 1 }
 0xa76   :  { %2046 = vsyncpa [#allocation4 + $0x1], 1 }

</bundles_post_ra>
